<compile_context>
chip_gen: v5e
topology: v5e:2x2
jax: 0.10.0
libtpu: 0.0.40
codegen_flags: <defaults>
</compile_context>

<pallas_src>
import functools

import jax
import jax.numpy as jnp
import numpy as np
from jax.experimental import pallas as pl
from jax.experimental.pallas import tpu as pltpu


def _round_up(x, m):
    return ((x + m - 1) // m) * m


# ----------------------------------------------------------------------------
# Kernel 1: fused TextCNN (all kernel sizes, one pallas_call)
# ----------------------------------------------------------------------------
def _textcnn_fused_kernel(x_ref, w_ref, b_ref, o_ref, *, kernel_sizes, c_out,
                          c_total_pad):
    """x_ref: (n_tile, L, C_in); w_ref: (C_in, sum(ks)*C_out);
    b_ref: (1, c_total_pad); o_ref: (n_tile, c_total_pad)."""
    n_tile, l_in, c_in = x_ref.shape
    # Single tall lane-dense contraction for every (branch, tap).
    x2 = x_ref[...].reshape(n_tile * l_in, c_in)
    p = jnp.dot(x2, w_ref[...], preferred_element_type=jnp.float32)
    p = p.reshape(n_tile, l_in, -1)                       # (n_tile, L, sum(ks)*C_out)

    pooled_parts = []
    tap = 0
    for ks in kernel_sizes:
        l_out = l_in - ks + 1
        acc = p[:, 0:l_out, tap * c_out:(tap + 1) * c_out]
        for k in range(1, ks):
            col = tap + k
            acc = acc + p[:, k:k + l_out, col * c_out:(col + 1) * c_out]
        tap += ks
        pooled_parts.append(jnp.max(acc, axis=1))         # (n_tile, C_out)
    c_total = len(kernel_sizes) * c_out
    if c_total_pad > c_total:                              # lane-dense (128x) store
        pooled_parts.append(jnp.zeros((n_tile, c_total_pad - c_total), jnp.float32))
    pooled = jnp.concatenate(pooled_parts, axis=-1)        # (n_tile, c_total_pad)
    # bias + ReLU hoisted to after the max-over-time (mathematically identical).
    o_ref[...] = jnp.maximum(pooled + b_ref[...], 0.0).astype(o_ref.dtype)


def textcnn_fused(x, w_all, b_all, *, kernel_sizes, c_out):
    """x: (N, L, C_in) f32. Returns (N, len(kernel_sizes)*C_out) f32."""
    n, l_in, c_in = x.shape
    c_total = len(kernel_sizes) * c_out
    c_total_pad = _round_up(c_total, 128)
    b_pad = b_all.reshape(1, c_total)
    if c_total_pad != c_total:
        b_pad = jnp.pad(b_pad, ((0, 0), (0, c_total_pad - c_total)))

    n_tile = min(512, _round_up(n, 8))
    n_pad = _round_up(n, n_tile)
    if n_pad != n:
        x = jnp.pad(x, ((0, n_pad - n), (0, 0), (0, 0)))

    kernel = functools.partial(_textcnn_fused_kernel,
                               kernel_sizes=tuple(kernel_sizes), c_out=c_out,
                               c_total_pad=c_total_pad)
    out = pl.pallas_call(
        kernel,
        out_shape=jax.ShapeDtypeStruct((n_pad, c_total_pad), jnp.float32),
        grid_spec=pltpu.PrefetchScalarGridSpec(
            num_scalar_prefetch=0,
            grid=(n_pad // n_tile,),
            in_specs=[
                pl.BlockSpec((n_tile, l_in, c_in), lambda i: (i, 0, 0)),
                pl.BlockSpec(w_all.shape, lambda i: (0, 0)),   # resident weights
                pl.BlockSpec(b_pad.shape, lambda i: (0, 0)),
            ],
            out_specs=pl.BlockSpec((n_tile, c_total_pad), lambda i: (i, 0)),
        ),
        compiler_params=pltpu.CompilerParams(
            dimension_semantics=("parallel",),
            vmem_limit_bytes=48 * 1024 * 1024),
    )(x, w_all, b_pad)
    return out[:n, :c_total]


# ----------------------------------------------------------------------------
# Kernel 2: rows-tiled linear (matmul + bias), output padded to 128 lanes
# ----------------------------------------------------------------------------
def _linear_kernel(x_ref, w_ref, b_ref, o_ref):
    o_ref[...] = (jnp.dot(x_ref[...], w_ref[...],
                          preferred_element_type=jnp.float32)
                  + b_ref[...]).astype(o_ref.dtype)


def linear_pallas(x, w, b):
    """x: (M, K); w: (K, N); b: (N,) or (1, N). Returns (M, N) f32."""
    m, k = x.shape
    n = w.shape[1]
    n_pad = _round_up(n, 128)                     # lane-dense output stores
    b2 = b.reshape(1, n)
    if n_pad != n:
        w = jnp.pad(w, ((0, 0), (0, n_pad - n)))
        b2 = jnp.pad(b2, ((0, 0), (0, n_pad - n)))

    m_tile = min(512, _round_up(m, 8))
    m_pad = _round_up(m, m_tile)
    if m_pad != m:
        x = jnp.pad(x, ((0, m_pad - m), (0, 0)))

    out = pl.pallas_call(
        _linear_kernel,
        out_shape=jax.ShapeDtypeStruct((m_pad, n_pad), jnp.float32),
        grid_spec=pltpu.PrefetchScalarGridSpec(
            num_scalar_prefetch=0,
            grid=(m_pad // m_tile,),
            in_specs=[
                pl.BlockSpec((m_tile, k), lambda i: (i, 0)),
                pl.BlockSpec((k, n_pad), lambda i: (0, 0)),    # resident weights
                pl.BlockSpec((1, n_pad), lambda i: (0, 0)),
            ],
            out_specs=pl.BlockSpec((m_tile, n_pad), lambda i: (i, 0)),
        ),
        compiler_params=pltpu.CompilerParams(
            dimension_semantics=("parallel",),
            vmem_limit_bytes=48 * 1024 * 1024),
    )(x, w, b2)
    return out[:m, :n]


# ----------------------------------------------------------------------------
# Kernel 3: masked BiLSTM recurrence, time-tiled, fused block-diag W_hh
# ----------------------------------------------------------------------------
def _bilstm_step_kernel(xpf_ref, xpb_ref, mask_ref, whh_ref, o_ref, h_sc, c_sc,
                        *, hidden, time_tile, seq_pad):
    blk = pl.program_id(0)

    @pl.when(blk == 0)
    def _():
        h_sc[...] = jnp.zeros_like(h_sc)
        c_sc[...] = jnp.zeros_like(c_sc)

    def step(s, carry):
        tf = blk * time_tile + s          # forward global time
        tb = seq_pad - 1 - tf             # backward global time
        m_f = mask_ref[tf] > 0.0          # (B, 1) bool, resident mask
        m_b = mask_ref[tb] > 0.0
        h = h_sc[...]                     # (B, 2H) = [h_f | h_b]
        c = c_sc[...]

        # One fused recurrent matmul for both directions (block-diag W_hh).
        rec = jnp.dot(h, whh_ref[...], preferred_element_type=jnp.float32)  # (B, 8H)
        g_f = xpf_ref[s] + rec[:, :4 * hidden]
        g_b = xpb_ref[time_tile - 1 - s] + rec[:, 4 * hidden:]

        def lstm_gates(g, c_prev):
            ig = jax.nn.sigmoid(g[:, :hidden])
            fg = jax.nn.sigmoid(g[:, hidden:2 * hidden])
            gg = jnp.tanh(g[:, 2 * hidden:3 * hidden])
            og = jax.nn.sigmoid(g[:, 3 * hidden:])
            c_new = fg * c_prev + ig * gg
            h_new = og * jnp.tanh(c_new)
            return h_new, c_new

        hf_new, cf_new = lstm_gates(g_f, c[:, :hidden])
        hb_new, cb_new = lstm_gates(g_b, c[:, hidden:])

        # Packed-sequence semantics: advance state only where the step is valid;
        # emit exactly 0 at padded positions (matches pad_packed_sequence).
        c_sc[...] = jnp.concatenate(
            [jnp.where(m_f, cf_new, c[:, :hidden]),
             jnp.where(m_b, cb_new, c[:, hidden:])], axis=-1)
        h_sc[...] = jnp.concatenate(
            [jnp.where(m_f, hf_new, h[:, :hidden]),
             jnp.where(m_b, hb_new, h[:, hidden:])], axis=-1)
        # Single (B, 2H) store: forward at time tf, backward kept time-reversed
        # (column group H:2H holds the backward output for time tb).
        o_ref[s] = jnp.concatenate(
            [jnp.where(m_f, hf_new, 0.0),
             jnp.where(m_b, hb_new, 0.0)], axis=-1)
        return carry

    jax.lax.fori_loop(0, time_tile, step, 0, unroll=True)


def bilstm_recurrence(xp_f, xp_b, tmask, whh_packed, *, hidden, time_tile):
    """xp_{f,b}: (T_pad, B, 4H) gate projections; tmask: (T_pad, B, 1);
    whh_packed: (2H, 8H) block-diagonal. Returns (T_pad, B, 2H) where [:H] is
    the forward output at time t and [H:] is the backward output at T_pad-1-t."""
    seq_pad, batch, g4 = xp_f.shape
    nblk = seq_pad // time_tile
    kernel = functools.partial(_bilstm_step_kernel, hidden=hidden,
                               time_tile=time_tile, seq_pad=seq_pad)
    out = pl.pallas_call(
        kernel,
        out_shape=jax.ShapeDtypeStruct((seq_pad, batch, 2 * hidden), jnp.float32),
        grid_spec=pltpu.PrefetchScalarGridSpec(
            num_scalar_prefetch=0,
            grid=(nblk,),
            in_specs=[
                pl.BlockSpec((time_tile, batch, g4), lambda t: (t, 0, 0)),
                pl.BlockSpec((time_tile, batch, g4), lambda t: (nblk - 1 - t, 0, 0)),
                pl.BlockSpec((seq_pad, batch, 1), lambda t: (0, 0, 0)),   # resident mask
                pl.BlockSpec((2 * hidden, 8 * hidden), lambda t: (0, 0)),  # resident W_hh
            ],
            out_specs=pl.BlockSpec((time_tile, batch, 2 * hidden),
                                   lambda t: (t, 0, 0)),
            scratch_shapes=[pltpu.VMEM((batch, 2 * hidden), jnp.float32)] * 2,
        ),
        compiler_params=pltpu.CompilerParams(
            dimension_semantics=("arbitrary",),   # sequential recurrence
            vmem_limit_bytes=48 * 1024 * 1024),
    )(xp_f, xp_b, tmask, whh_packed)
    return out


# ----------------------------------------------------------------------------
# One-time parameter packing (PyTorch layouts -> kernel-friendly layouts)
# ----------------------------------------------------------------------------
def prepare_params(raw, config):
    p = {"token_emb": raw["token_emb"], "pos_emb": raw["pos_emb"],
         "char_emb": raw["char_emb"]}

    # TextCNN: pack every (branch, tap) Conv1d slice into one lane-dense matrix.
    cols, biases = [], []
    for conv, ks in zip(raw["convs"], config["char_kernel_sizes"]):
        w = conv["w"]                                   # (C_out, C_in, ks)
        for k in range(ks):
            cols.append(jnp.transpose(w[:, :, k]))      # (C_in, C_out)
        biases.append(conv["b"])
    p["cnn_w"] = jnp.concatenate(cols, axis=1)          # (C_in, sum(ks)*C_out)
    p["cnn_b"] = jnp.concatenate(biases).reshape(1, -1)

    # BiLSTM: fuse both directions' input projections + both biases.
    p["lstm_wx"] = jnp.concatenate(
        [jnp.transpose(raw["w_ih_f"]), jnp.transpose(raw["w_ih_b"])], axis=1)  # (E, 8H)
    p["lstm_bx"] = jnp.concatenate(
        [raw["b_ih_f"] + raw["b_hh_f"], raw["b_ih_b"] + raw["b_hh_b"]]).reshape(1, -1)

    # Recurrent weights: block-diagonal (2H, 8H) so both directions use ONE matmul.
    hidden = raw["w_hh_f"].shape[1]
    z = jnp.zeros((hidden, 4 * hidden), jnp.float32)
    p["lstm_whh"] = jnp.concatenate(
        [jnp.concatenate([jnp.transpose(raw["w_hh_f"]), z], axis=1),
         jnp.concatenate([z, jnp.transpose(raw["w_hh_b"])], axis=1)], axis=0)

    # Classification head.
    p["lin_w"] = jnp.transpose(raw["w_lin"])            # (2H, label)
    p["lin_b"] = raw["b_lin"]
    return p


# ----------------------------------------------------------------------------
# Full forward (use_char_cnn=True, use_crf=False, use_mha=False)
# ----------------------------------------------------------------------------
def glove_lstm_crf_forward(token_ids, pos_ids, char_ids, params, config,
                           time_tile=8):
    bsz, seq = token_ids.shape
    hidden = config["lstm_hidden_dim"]
    char_n_ctx = config["char_n_ctx"]
    c_out = config["char_num_filters"]
    ksizes = config["char_kernel_sizes"]

    # mask = sign(abs(token_ids)); lengths = sum(mask)
    lengths = jnp.sum((token_ids != 0).astype(jnp.int32), axis=1)          # (B,)

    # Embedding lookups (gathers: plain JAX glue).
    tok = jnp.take(params["token_emb"], token_ids, axis=0)                 # (B,S,Dt)
    pos = jnp.take(params["pos_emb"], pos_ids, axis=0)                     # (B,S,Dp)

    # CharCNN: embed chars, zero padded chars, fused TextCNN kernel.
    cmask = (char_ids != config["char_padding_idx"]).astype(jnp.float32)[..., None]
    ch = jnp.take(params["char_emb"], char_ids, axis=0) * cmask            # (B,S,Cn,Dc)
    ch = ch.reshape(bsz * seq, char_n_ctx, -1)
    char_feat = textcnn_fused(ch, params["cnn_w"], params["cnn_b"],
                              kernel_sizes=ksizes, c_out=c_out)
    char_feat = char_feat.reshape(bsz, seq, -1)

    embed_out = jnp.concatenate([tok, pos, char_feat], axis=-1)            # (B,S,E)
    # nn.Dropout -> identity at inference time.

    # BiLSTM input projection for both directions in one lane-dense matmul.
    x_tb = jnp.transpose(embed_out, (1, 0, 2))                             # (S,B,E)
    emb_dim = x_tb.shape[-1]
    xp = linear_pallas(x_tb.reshape(seq * bsz, emb_dim),
                       params["lstm_wx"], params["lstm_bx"])               # (S*B,8H)
    xp = xp.reshape(seq, bsz, 8 * hidden)

    # Pad the time axis to a multiple of the recurrence time tile (padded steps
    # have mask 0 -> state frozen, outputs 0 -> dropped below).
    seq_pad = _round_up(seq, time_tile)
    if seq_pad != seq:
        xp = jnp.pad(xp, ((0, seq_pad - seq), (0, 0), (0, 0)))
    xp_f = xp[:, :, :4 * hidden]
    xp_b = xp[:, :, 4 * hidden:]

    # Validity mask (t < length[b]) reproduces pack/pad_packed semantics.
    tmask = (jnp.arange(seq_pad)[:, None] < lengths[None, :]).astype(jnp.float32)
    tmask = tmask.reshape(seq_pad, bsz, 1)

    # TODO(synk): only lstm_num_layers == 1 implemented; deeper stacks would
    # re-apply the projection + recurrence kernels per layer.
    out = bilstm_recurrence(xp_f, xp_b, tmask, params["lstm_whh"],
                            hidden=hidden, time_tile=time_tile)            # (Sp,B,2H)
    out_f = out[:, :, :hidden]
    out_b = jnp.flip(out[:, :, hidden:], axis=0)   # undo reversed backward layout
    lstm_out = jnp.concatenate([out_f, out_b], axis=-1)[:seq]              # (S,B,2H)
    # nn.Dropout -> identity at inference time.
    # TODO(synk): use_mha branch (nn.MultiheadAttention + LayerNorm) not implemented
    # (module default use_mha=False).

    logits = linear_pallas(lstm_out.reshape(seq * bsz, 2 * hidden),
                           params["lin_w"], params["lin_b"])               # (S*B,L)
    logits = logits.reshape(seq, bsz, -1).transpose(1, 0, 2)               # (B,S,L)
    # TODO(synk): use_crf / NCRF Viterbi decode not implemented (module default
    # use_crf=False returns logits).
    return logits


# ----------------------------------------------------------------------------
# Pure-JAX reference (replicates the PyTorch semantics) for validation
# ----------------------------------------------------------------------------
def _ref_lstm_direction(xp, w_hh_t, mask, hidden, reverse):
    def cell(carry, inp):
        h, c = carry
        x_t, m_t = inp
        gates = x_t + jnp.dot(h, w_hh_t)
        i = jax.nn.sigmoid(gates[:, :hidden])
        f = jax.nn.sigmoid(gates[:, hidden:2 * hidden])
        g = jnp.tanh(gates[:, 2 * hidden:3 * hidden])
        o = jax.nn.sigmoid(gates[:, 3 * hidden:])
        c_new = f * c + i * g
        h_new = o * jnp.tanh(c_new)
        c = m_t * c_new + (1.0 - m_t) * c
        h = m_t * h_new + (1.0 - m_t) * h
        return (h, c), m_t * h_new

    _, bsz, _ = xp.shape
    init = (jnp.zeros((bsz, hidden), jnp.float32),
            jnp.zeros((bsz, hidden), jnp.float32))
    xs = (xp[::-1], mask[::-1]) if reverse else (xp, mask)
    _, ys = jax.lax.scan(cell, init, xs)
    return ys[::-1] if reverse else ys


def reference_forward(token_ids, pos_ids, char_ids, raw, config):
    bsz, seq = token_ids.shape
    hidden = config["lstm_hidden_dim"]
    char_n_ctx = config["char_n_ctx"]

    lengths = jnp.sum((token_ids != 0).astype(jnp.int32), axis=1)
    tok = jnp.take(raw["token_emb"], token_ids, axis=0)
    pos = jnp.take(raw["pos_emb"], pos_ids, axis=0)

    cmask = (char_ids != config["char_padding_idx"]).astype(jnp.float32)[..., None]
    ch = jnp.take(raw["char_emb"], char_ids, axis=0) * cmask
    ch = ch.reshape(bsz * seq, char_n_ctx, -1)

    pooled = []
    for conv, ks in zip(raw["convs"], config["char_kernel_sizes"]):
        w, b = conv["w"], conv["b"]
        l_out = char_n_ctx - ks + 1
        acc = jnp.zeros((ch.shape[0], l_out, w.shape[0]), jnp.float32)
        for k in range(ks):
            acc = acc + jnp.einsum("nlc,oc->nlo", ch[:, k:k + l_out, :], w[:, :, k])
        acc = jax.nn.relu(acc + b[None, None, :])
        pooled.append(jnp.max(acc, axis=1))
    char_feat = jnp.concatenate(pooled, axis=-1).reshape(bsz, seq, -1)

    embed_out = jnp.concatenate([tok, pos, char_feat], axis=-1)
    x_tb = jnp.transpose(embed_out, (1, 0, 2))

    tmask = (jnp.arange(seq)[:, None] < lengths[None, :]).astype(jnp.float32)
    tmask = tmask.reshape(seq, bsz, 1)

    xp_f = jnp.dot(x_tb, raw["w_ih_f"].T) + raw["b_ih_f"] + raw["b_hh_f"]
    xp_b = jnp.dot(x_tb, raw["w_ih_b"].T) + raw["b_ih_b"] + raw["b_hh_b"]
    out_f = _ref_lstm_direction(xp_f, raw["w_hh_f"].T, tmask, hidden, reverse=False)
    out_b = _ref_lstm_direction(xp_b, raw["w_hh_b"].T, tmask, hidden, reverse=True)
    lstm_out = jnp.concatenate([out_f, out_b], axis=-1)

    logits = jnp.dot(lstm_out, raw["w_lin"].T) + raw["b_lin"]
    return jnp.transpose(logits, (1, 0, 2))


if __name__ == "__main__":
    config = {
        "n_ctx": 8,
        "char_n_ctx": 12,
        "char_vocab_size": 30,
        "char_emb_dim": 16,
        "char_num_filters": 16,
        "char_kernel_sizes": (2, 3),
        "char_padding_idx": 0,
        "pad_token_id": 0,
        "pad_pos_id": 0,
        "token_vocab_size": 50,
        "token_emb_dim": 32,
        "pos_vocab_size": 10,
        "pos_emb_dim": 8,
        "lstm_hidden_dim": 32,
        "label_size": 5,
    }
    bsz, seq = 2, config["n_ctx"]
    hidden = config["lstm_hidden_dim"]
    emb_dim = (config["token_emb_dim"] + config["pos_emb_dim"]
               + len(config["char_kernel_sizes"]) * config["char_num_filters"])

    key = jax.random.PRNGKey(0)
    keys = jax.random.split(key, 32)
    kit = iter(keys)

    def nrm(k, shape, scale=0.1):
        return scale * jax.random.normal(k, shape, dtype=jnp.float32)

    # Embedding tables (padding_idx rows zeroed, as nn.Embedding does).
    token_emb = nrm(next(kit), (config["token_vocab_size"], config["token_emb_dim"]), 1.0)
    token_emb = token_emb.at[config["pad_token_id"]].set(0.0)
    pos_emb = nrm(next(kit), (config["pos_vocab_size"], config["pos_emb_dim"]), 1.0)
    pos_emb = pos_emb.at[config["pad_pos_id"]].set(0.0)
    char_emb = nrm(next(kit), (config["char_vocab_size"], config["char_emb_dim"]), 1.0)
    char_emb = char_emb.at[config["char_padding_idx"]].set(0.0)

    convs = []
    for ks in config["char_kernel_sizes"]:
        convs.append({
            "w": nrm(next(kit), (config["char_num_filters"], config["char_emb_dim"], ks)),
            "b": nrm(next(kit), (config["char_num_filters"],)),
        })

    raw = {
        "token_emb": token_emb, "pos_emb": pos_emb, "char_emb": char_emb, "convs": convs,
        "w_ih_f": nrm(next(kit), (4 * hidden, emb_dim)),
        "w_hh_f": nrm(next(kit), (4 * hidden, hidden)),
        "b_ih_f": nrm(next(kit), (4 * hidden,)),
        "b_hh_f": nrm(next(kit), (4 * hidden,)),
        "w_ih_b": nrm(next(kit), (4 * hidden, emb_dim)),
        "w_hh_b": nrm(next(kit), (4 * hidden, hidden)),
        "b_ih_b": nrm(next(kit), (4 * hidden,)),
        "b_hh_b": nrm(next(kit), (4 * hidden,)),
        "w_lin": nrm(next(kit), (config["label_size"], 2 * hidden)),
        "b_lin": nrm(next(kit), (config["label_size"],)),
    }

    # Inputs: variable-length sequences (pad id = 0 at the tail).
    lengths = jnp.array([seq, seq - 3], dtype=jnp.int32)
    valid = jnp.arange(seq)[None, :] < lengths[:, None]                      # (B,S)
    token_ids = jax.random.randint(next(kit), (bsz, seq), 1,
                                   config["token_vocab_size"], dtype=jnp.int32)
    token_ids = jnp.where(valid, token_ids, 0)
    pos_ids = jax.random.randint(next(kit), (bsz, seq), 1,
                                 config["pos_vocab_size"], dtype=jnp.int32)
    pos_ids = jnp.where(valid, pos_ids, 0)
    char_ids = jax.random.randint(next(kit), (bsz, seq, config["char_n_ctx"]), 1,
                                  config["char_vocab_size"], dtype=jnp.int32)
    char_valid = jnp.arange(config["char_n_ctx"])[None, None, :] < 8
    char_ids = jnp.where(valid[:, :, None] & char_valid, char_ids, 0)

    params = prepare_params(raw, config)
    logits = glove_lstm_crf_forward(token_ids, pos_ids, char_ids, params, config)
    logits = jax.block_until_ready(logits)

    ref = jax.block_until_ready(
        reference_forward(token_ids, pos_ids, char_ids, raw, config))

    assert logits.shape == (bsz, seq, config["label_size"]), logits.shape
    np.testing.assert_allclose(np.asarray(logits), np.asarray(ref),
                               rtol=2e-3, atol=2e-3)
    print("KERNEL_OK")
</pallas_src>

<mosaic_0001>
module attributes {stable_mosaic.version = 11 : i64} {
  func.func @_textcnn_fused_kernel(%arg0: i32, %arg1: memref<16x12x16xf32, #tpu.memory_space<vmem>>, %arg2: memref<16x80xf32, #tpu.memory_space<vmem>>, %arg3: memref<1x128xf32, #tpu.memory_space<vmem>>, %arg4: memref<16x128xf32, #tpu.memory_space<vmem>>) attributes {dimension_semantics = [#tpu.dimension_semantics<parallel>], iteration_bounds = array<i64: 1>, scalar_prefetch = 0 : i64, scratch_operands = 0 : i64, tpu.core_type = #tpu.core_type<tc>, window_params = [{transform_indices = @transform_0, window_bounds = array<i64: 16, 12, 16>}, {pipeline_mode = #tpu.pipeline_mode<synchronous>, transform_indices = @transform_1, window_bounds = array<i64: 16, 80>}, {pipeline_mode = #tpu.pipeline_mode<synchronous>, transform_indices = @transform_2, window_bounds = array<i64: 1, 128>}, {transform_indices = @transform_3, window_bounds = array<i64: 16, 128>}]} {
    %c0 = arith.constant 0 : index
    %c0_0 = arith.constant 0 : index
    %c0_1 = arith.constant 0 : index
    %0 = vector.load %arg1[%c0, %c0_0, %c0_1] : memref<16x12x16xf32, #tpu.memory_space<vmem>>, vector<16x12x16xf32>
    %1 = vector.shape_cast %0 : vector<16x12x16xf32> to vector<192x16xf32>
    %c0_2 = arith.constant 0 : index
    %c0_3 = arith.constant 0 : index
    %2 = vector.load %arg2[%c0_2, %c0_3] : memref<16x80xf32, #tpu.memory_space<vmem>>, vector<16x80xf32>
    %cst = arith.constant dense<0.000000e+00> : vector<192x80xf32>
    %3 = tpu.matmul %1, %2, %cst {dimension_numbers = #tpu.dot_dimension_numbers<[1], [0], [0], [1], [0, 0, 1, 1], [], []>} : vector<192x16xf32>, vector<16x80xf32>, vector<192x80xf32> -> vector<192x80xf32>
    %4 = vector.shape_cast %3 : vector<192x80xf32> to vector<16x12x80xf32>
    %5 = vector.extract_strided_slice %4 {offsets = [0, 0, 0], sizes = [16, 11, 16], strides = [1, 1, 1]} : vector<16x12x80xf32> to vector<16x11x16xf32>
    %6 = vector.extract_strided_slice %4 {offsets = [0, 1, 16], sizes = [16, 11, 16], strides = [1, 1, 1]} : vector<16x12x80xf32> to vector<16x11x16xf32>
    %7 = arith.addf %5, %6 : vector<16x11x16xf32>
    %cst_4 = arith.constant dense<0xFF800000> : vector<16x16xf32>
    %8 = vector.multi_reduction <maximumf>, %7, %cst_4 [1] : vector<16x11x16xf32> to vector<16x16xf32>
    %9 = vector.extract_strided_slice %4 {offsets = [0, 0, 32], sizes = [16, 10, 16], strides = [1, 1, 1]} : vector<16x12x80xf32> to vector<16x10x16xf32>
    %10 = vector.extract_strided_slice %4 {offsets = [0, 1, 48], sizes = [16, 10, 16], strides = [1, 1, 1]} : vector<16x12x80xf32> to vector<16x10x16xf32>
    %11 = arith.addf %9, %10 : vector<16x10x16xf32>
    %12 = vector.extract_strided_slice %4 {offsets = [0, 2, 64], sizes = [16, 10, 16], strides = [1, 1, 1]} : vector<16x12x80xf32> to vector<16x10x16xf32>
    %13 = arith.addf %11, %12 : vector<16x10x16xf32>
    %cst_5 = arith.constant dense<0xFF800000> : vector<16x16xf32>
    %14 = vector.multi_reduction <maximumf>, %13, %cst_5 [1] : vector<16x10x16xf32> to vector<16x16xf32>
    %cst_6 = arith.constant 0.000000e+00 : f32
    %15 = vector.broadcast %cst_6 : f32 to vector<16x96xf32>
    %16 = tpu.concatenate %8, %14, %15 in 1 : vector<16x16xf32>, vector<16x16xf32>, vector<16x96xf32> -> vector<16x128xf32>
    %c0_7 = arith.constant 0 : index
    %c0_8 = arith.constant 0 : index
    %17 = vector.load %arg3[%c0_7, %c0_8] : memref<1x128xf32, #tpu.memory_space<vmem>>, vector<1x128xf32>
    %18 = vector.broadcast %17 : vector<1x128xf32> to vector<16x128xf32>
    %19 = arith.addf %16, %18 : vector<16x128xf32>
    %cst_9 = arith.constant 0.000000e+00 : f32
    %20 = vector.broadcast %cst_9 : f32 to vector<16x128xf32>
    %21 = arith.maximumf %19, %20 : vector<16x128xf32>
    %c0_10 = arith.constant 0 : index
    %c0_11 = arith.constant 0 : index
    %22 = vector.load %arg4[%c0_10, %c0_11] : memref<16x128xf32, #tpu.memory_space<vmem>>, vector<16x128xf32>
    tpu.vector_store %arg4[%c0_10, %c0_11], %21 {strides = array<i32>} : memref<16x128xf32, #tpu.memory_space<vmem>>, vector<16x128xf32>,
    return
  }
  func.func @transform_0(%arg0: i32) -> (i32, i32, i32) {
    %c0_i32 = arith.constant 0 : i32
    %c0_i32_0 = arith.constant 0 : i32
    %c0_i32_1 = arith.constant 0 : i32
    return %arg0, %c0_i32, %c0_i32_0 : i32, i32, i32
  }
  func.func @transform_1(%arg0: i32) -> (i32, i32) {
    %c0_i32 = arith.constant 0 : i32
    %c0_i32_0 = arith.constant 0 : i32
    %c0_i32_1 = arith.constant 0 : i32
    return %c0_i32, %c0_i32_0 : i32, i32
  }
  func.func @transform_2(%arg0: i32) -> (i32, i32) {
    %c0_i32 = arith.constant 0 : i32
    %c0_i32_0 = arith.constant 0 : i32
    %c0_i32_1 = arith.constant 0 : i32
    return %c0_i32, %c0_i32_0 : i32, i32
  }
  func.func @transform_3(%arg0: i32) -> (i32, i32) {
    %c0_i32 = arith.constant 0 : i32
    %c0_i32_0 = arith.constant 0 : i32
    return %arg0, %c0_i32 : i32, i32
  }
}

</mosaic_0001>

<bundles_post_ra>
// kernel: tpu_custom_call.1
= control target key start
LH: loop header
LB: loop body
LE: loop exit
PB: predicated region body
PF: predicated region fallthrough
CT: control target
= control target key end

     0   :  { %vm176_vm0 = vcmask 130048   ;;  %s2986_s0 = inlined_call_operand.vmem [shape: f32[16,12,16], index: 0, kind: input, shape index: {}]   ;;  %s2987_s1 = inlined_call_operand.vmem [shape: f32[16,80], index: 1, kind: input, shape index: {}]   ;;  %s2988_s2 = inlined_call_operand.vmem [shape: f32[1,128], index: 2, kind: input, shape index: {}]   ;;  %s2989_s3 = inlined_call_operand.hbm [shape: f32[16,128], index: 3, kind: output, shape index: {}]  }
   0x1   :  { %v96_v0 = vld [vmem:[%s2987_s1 + $0x8] sm:$0xff]  ;;  %v95_v1 = vld [vmem:[%s2987_s1] sm:$0xff]  ;;  %v17_v5 = vld [vmem:[%s2986_s0 + $0x10] sm:$0xff] }
   0x2   :  { %v15_v2 = vld [vmem:[%s2986_s0] sm:$0xff]  ;;  %239 = vmatpush.msra.mxu0 %v96_v0  ;;  %1817 = vmatpush.msra.mxu1 %v96_v0  ;;  %v16_v4 = vld [vmem:[%s2986_s0 + $0x8] sm:$0xf]  ;;  %v80_v6 = vrot.slane %v17_v5, 4  ;;  %v18_v7 = vld [vmem:[%s2986_s0 + $0x18] sm:$0xf] }
   0x3   :  { %v79_v3 = vrot.slane %v15_v2, 4  ;;  %97 = vst [vmem:[#allocation1] ss:$2 sm:$0xff] %v15_v2  ;;  %1818 = vmatpush.msra.mxu2 %v96_v0  ;;  %1819 = vmatpush.msra.mxu3 %v96_v0  ;;  %v19_v8 = vld [vmem:[%s2986_s0 + $0x20] sm:$0xff]  ;;  %v20_v11 = vld [vmem:[%s2986_s0 + $0x28] sm:$0xf] }
   0x4   :  { %101 = vst [vmem:[#allocation1 + $0x10] ss:$2 sm:$0xff] %v16_v4  ;;  %240 = vmatpush.msra.mxu0 %v95_v1  ;;  %1820 = vmatpush.msra.mxu1 %v95_v1  ;;  %v23_v9 = vld [vmem:[%s2986_s0 + $0x40] sm:$0xff]  ;;  %v81_v10 = vrot.slane %v19_v8, 4 }
   0x5   :  { %99 = vst [vmem:[#allocation1 + $0x1] ss:$2 sm:$0xff] %v79_v3  ;;  %1821 = vmatpush.msra.mxu2 %v95_v1  ;;  %1822 = vmatpush.msra.mxu3 %v95_v1 }
   0x6   :  { %103 = vst [vmem:[#allocation1 + $0x11] ss:$2 sm:$0xff] %v17_v5 }
   0x7   :  { %105 = vst [vmem:[#allocation1 + $0x20] ss:$2 sm:$0xff] %v80_v6 }
   0x8   :  { %107 = vst [vmem:[#allocation1 + $0x21] ss:$2 sm:$0xff] %v18_v7 }
   0x9   :  { %109 = vst [vmem:[#allocation1 + $0x30] ss:$2 sm:$0xff] %v19_v8 }
   0xa   :  { %8 = vsyncpa [#allocation3], 0  ;;  %v21_v12 = vld [vmem:[%s2986_s0 + $0x30] sm:$0xff]  ;;  %111 = vst [vmem:[#allocation1 + $0x31] ss:$2 sm:$0xff] %v81_v10  ;;  %v83_v14 = vrot.slane %v23_v9, 4 }
   0xb   :  { %v24_v16 = vld [vmem:[%s2986_s0 + $0x48] sm:$0xf]  ;;  %v25_v18 = vld [vmem:[%s2986_s0 + $0x50] sm:$0xff]  ;;  %v22_v19 = vld [vmem:[%s2986_s0 + $0x38] sm:$0xf]  ;;  %v82_v20 = vrot.slane %v21_v12, 4 }
   0xc   :  { %v112_v13 = vld.sshfl [vmem:[#allocation1] sm:$0xff pattern:$0x75316420]  ;;  %v84_v21 = vrot.slane %v25_v18, 4  ;;  %v26_v23 = vld [vmem:[%s2986_s0 + $0x58] sm:$0xf] }
   0xd   :  { %1761 = vmatmul.msk.f32.vlgmr.msra.gmra.mxu0 %vm176_vm0, %v112_v13  ;;  %116 = vst [vmem:[#allocation1] ss:$2 sm:$0xff] %v20_v11  ;;  %v113_v17 = vld.sshfl [vmem:[#allocation1 + $0x10] sm:$0xff pattern:$0x75316420]  ;;  %v27_v26 = vld [vmem:[%s2986_s0 + $0x60] sm:$0xff] }
   0xe   :  { %117 = vst [vmem:[#allocation1 + $0x1] ss:$2 sm:$0xff] %v21_v12  ;;  %v28_v25 = vld [vmem:[%s2986_s0 + $0x68] sm:$0xf]  ;;  %v29_v27 = vld [vmem:[%s2986_s0 + $0x70] sm:$0xff]  ;;  %v31_v29 = vld [vmem:[%s2986_s0 + $0x80] sm:$0xff] }
   0xf   :  { %v114_v15 = vld.sshfl [vmem:[#allocation1 + $0x20] sm:$0xff pattern:$0x75316420]  ;;  %119 = vst [vmem:[#allocation1 + $0x11] ss:$2 sm:$0xff] %v22_v19  ;;  %v85_v30 = vrot.slane %v27_v26, 4 }
  0x10   :  { %120 = vst [vmem:[#allocation1 + $0x20] ss:$2 sm:$0xff] %v23_v9  ;;  %v87_v31 = vrot.slane %v31_v29, 4  ;;  %v33_v33 = vld [vmem:[%s2986_s0 + $0x90] sm:$0xff]  ;;  %v86_v35 = vrot.slane %v29_v27, 4  ;;  %v39_v43 = vld [vmem:[%s2986_s0 + $0xc0] sm:$0xff] }
  0x11   :  { %121 = vst [vmem:[#allocation1 + $0x21] ss:$2 sm:$0xff] %v83_v14  ;;  %v115_v22 = vld.sshfl [vmem:[#allocation1 + $0x30] sm:$0xff pattern:$0x75316420]  ;;  %v88_v37 = vrot.slane %v33_v33, 4 }
  0x12   :  { %122 = vst [vmem:[#allocation1 + $0x30] ss:$2 sm:$0xff] %v24_v16  ;;  %v34_v38 = vld [vmem:[%s2986_s0 + $0x98] sm:$0xf]  ;;  %v32_v41 = vld [vmem:[%s2986_s0 + $0x88] sm:$0xf] }
  0x13   :  { %123 = vst [vmem:[#allocation1 + $0x31] ss:$2 sm:$0xff] %v25_v18  ;;  %v30_v39 = vld [vmem:[%s2986_s0 + $0x78] sm:$0xf]  ;;  %v36_v42 = vld [vmem:[%s2986_s0 + $0xa8] sm:$0xf] }
  0x14   :  { %118 = vst [vmem:[#allocation1 + $0x10] ss:$2 sm:$0xff] %v82_v20  ;;  %v37_v45 = vld [vmem:[%s2986_s0 + $0xb0] sm:$0xff]  ;;  %v35_v47 = vld [vmem:[%s2986_s0 + $0xa0] sm:$0xff]  ;;  %v91_v48 = vrot.slane %v39_v43, 4  ;;  %vm386_vm1 = vcmask 1042432  }
  0x15   :  { %1762 = vmatmul.msk.f32.gmra.mxu0 %vm176_vm0, %v113_v17  ;;  %v124_v24 = vld.sshfl [vmem:[#allocation1] sm:$0xff pattern:$0x75316420]  ;;  %v89_v50 = vrot.slane %v35_v47, 4  ;;  %v42_v52 = vld [vmem:[%s2986_s0 + $0xd8] sm:$0xf] }
  0x16   :  { %128 = vst [vmem:[#allocation1] ss:$2 sm:$0xff] %v84_v21  ;;  %v41_v53 = vld [vmem:[%s2986_s0 + $0xd0] sm:$0xff]  ;;  %v44_v57 = vld [vmem:[%s2986_s0 + $0xe8] sm:$0xf]  ;;  %v90_v0 = vrot.slane %v37_v45, 4 }
  0x17   :  { %129 = vst [vmem:[#allocation1 + $0x1] ss:$2 sm:$0xff] %v26_v23  ;;  %v92_v55 = vrot.slane %v41_v53, 4  ;;  %v45_v58 = vld [vmem:[%s2986_s0 + $0xf0] sm:$0xff]  ;;  %v40_v60 = vld [vmem:[%s2986_s0 + $0xc8] sm:$0xf] }
  0x18   :  { %v126_v28 = vld.sshfl [vmem:[#allocation1 + $0x20] sm:$0xff pattern:$0x75316420]  ;;  %v38_v1 = vld [vmem:[%s2986_s0 + $0xb8] sm:$0xf]  ;;  %vm387_vm2 = vcmask 1046532  }
  0x19   :  { %1767 = vmatmul.msk.f32.vlgmr.msra.gmra.mxu1 %vm176_vm0, %v126_v28  ;;  %132 = vst [vmem:[#allocation1 + $0x20] ss:$2 sm:$0xff] %v28_v25  ;;  %v43_v2 = vld [vmem:[%s2986_s0 + $0xe0] sm:$0xff]  ;;  %v94_v8 = vrot.slane %v45_v58, 4  ;;  %vm2006_vm3 = vmor %vm386_vm1, %vm387_vm2  ;;  %v46_v11 = vld [vmem:[%s2986_s0 + $0xf8] sm:$0xf] }
  0x1a   :  { %133 = vst [vmem:[#allocation1 + $0x21] ss:$2 sm:$0xff] %v29_v27  ;;  %v127_v34 = vld.sshfl [vmem:[#allocation1 + $0x30] sm:$0xff pattern:$0x75316420]  ;;  %v93_v3 = vrot.slane %v43_v2, 4 }
  0x1b   :  { %v125_v32 = vld.sshfl [vmem:[#allocation1 + $0x10] sm:$0xff pattern:$0x75316420]  ;;  %134 = vst [vmem:[#allocation1 + $0x30] ss:$2 sm:$0xff] %v86_v35  ;;  %s1855_s23 = smov 112  }
  0x1c   :  { %130 = vst [vmem:[#allocation1 + $0x10] ss:$2 sm:$0xff] %v27_v26  ;;  %vm1019_vm4 = vcmask 1041408   ;;  %vm1020_vm5 = vcmask 1045508   ;;  %s1856_s0 = smov 96   ;;  %vm875_vm7 = vcmask 124928  }
  0x1d   :  { %1763 = vmatmul.msk.f32.gmra.mxu0 %vm176_vm0, %v114_v15  ;;  %131 = vst [vmem:[#allocation1 + $0x11] ss:$2 sm:$0xff] %v85_v30  ;;  %vm2023_vm6 = vmor %vm1019_vm4, %vm1020_vm5  ;;  %vm1669_vm8 = vcmask 1041409   ;;  %vm1671_vm9 = vcmask 1042434   ;;  %vm1507_vm10 = vcmask 392448   ;;  %vm1673_vm11 = vcmask 1043459  }
  0x1e   :  { %v136_v36 = vld.sshfl [vmem:[#allocation1] sm:$0xff pattern:$0x75316420]  ;;  %135 = vst [vmem:[#allocation1 + $0x31] ss:$2 sm:$0xff] %v30_v39  ;;  %vm1509_vm12 = vcmask 386304  }
  0x1f   :  { %140 = vst [vmem:[#allocation1] ss:$2 sm:$0xff] %v31_v29  ;;  %vm1675_vm13 = vcmask 1044484   ;;  %vm1677_vm14 = vcmask 1045509   ;;  %vm1679_vm15 = vcmask 1046534   ;;  %vm1681_vm1 = vcmask 1047559  }
  0x20   :  { %141 = vst [vmem:[#allocation1 + $0x1] ss:$2 sm:$0xff] %v87_v31  ;;  %vm1730_vm2 = vcmask 261120   ;;  %s1857_s26 = smov [#allocation2]   ;;  %s1749_s30 = sshll.u32 %s2989_s3, 4  ;;  %s1750_s30 = int_to_ptr.hbm [resolvable:$true] %s1749_s30 }
  0x21   :  { %1768 = vmatmul.msk.f32.gmra.mxu1 %vm176_vm0, %v127_v34  ;;  %v138_v40 = vld.sshfl [vmem:[#allocation1 + $0x20] sm:$0xff pattern:$0x75316420]  ;;  %s1747_s27 = sshll.u32 %s1857_s26, 4  ;;  %s1859_s4 = smov 8   ;;  %s1748_s27 = int_to_ptr.vmem [resolvable:$true] %s1747_s27 }
  0x22   :  { %144 = vst [vmem:[#allocation1 + $0x20] ss:$2 sm:$0xff] %v88_v37 }
  0x23   :  { %145 = vst [vmem:[#allocation1 + $0x21] ss:$2 sm:$0xff] %v34_v38 }
  0x24   :  { %v137_v44 = vld.sshfl [vmem:[#allocation1 + $0x10] sm:$0xff pattern:$0x75316420] }
  0x25   :  { %1764 = vmatmul.msk.f32.gmra.mxu0 %vm176_vm0, %v115_v22  ;;  %142 = vst [vmem:[#allocation1 + $0x10] ss:$2 sm:$0xff] %v32_v41  ;;  %v139_v51 = vld.sshfl [vmem:[#allocation1 + $0x30] sm:$0xff pattern:$0x75316420] }
  0x26   :  { %143 = vst [vmem:[#allocation1 + $0x11] ss:$2 sm:$0xff] %v33_v33 }
  0x27   :  { %v148_v46 = vld.sshfl [vmem:[#allocation1] sm:$0xff pattern:$0x75316420]  ;;  %146 = vst [vmem:[#allocation1 + $0x30] ss:$2 sm:$0xff] %v35_v47 }
  0x28   :  { %152 = vst [vmem:[#allocation1] ss:$2 sm:$0xff] %v36_v42  ;;  %1773 = vmatmul.msk.f32.vlgmr.msra.gmra.mxu2 %vm176_vm0, %v148_v46 }
  0x29   :  { %153 = vst [vmem:[#allocation1 + $0x1] ss:$2 sm:$0xff] %v37_v45  ;;  %1769 = vmatmul.msk.f32.gmra.mxu1 %vm176_vm0, %v136_v36 }
  0x2a   :  { %v150_v49 = vld.sshfl [vmem:[#allocation1 + $0x20] sm:$0xff pattern:$0x75316420]  ;;  %147 = vst [vmem:[#allocation1 + $0x31] ss:$2 sm:$0xff] %v89_v50 }
  0x2b   :  { %156 = vst [vmem:[#allocation1 + $0x20] ss:$2 sm:$0xff] %v39_v43 }
  0x2c   :  { %157 = vst [vmem:[#allocation1 + $0x21] ss:$2 sm:$0xff] %v91_v48 }
  0x2d   :  { %1765 = vmatmul.msk.f32.gmra.mxu0 %vm176_vm0, %v124_v24  ;;  %v149_v54 = vld.sshfl [vmem:[#allocation1 + $0x10] sm:$0xff pattern:$0x75316420] }
  0x2e   :  { %154 = vst [vmem:[#allocation1 + $0x10] ss:$2 sm:$0xff] %v90_v0 }
  0x2f   :  { %155 = vst [vmem:[#allocation1 + $0x11] ss:$2 sm:$0xff] %v38_v1 }
  0x30   :  { %v160_v56 = vld.sshfl [vmem:[#allocation1] sm:$0xff pattern:$0x75316420]  ;;  %1774 = vmatmul.msk.f32.gmra.mxu2 %vm176_vm0, %v149_v54 }
  0x31   :  { %165 = vst [vmem:[#allocation1 + $0x1] ss:$2 sm:$0xff] %v42_v52  ;;  %1770 = vmatmul.msk.f32.gmra.mxu1 %vm176_vm0, %v137_v44  ;;  %v151_v61 = vld.sshfl [vmem:[#allocation1 + $0x30] sm:$0xff pattern:$0x75316420] }
  0x32   :  { %164 = vst [vmem:[#allocation1] ss:$2 sm:$0xff] %v92_v55 }
  0x33   :  { %v162_v59 = vld.sshfl [vmem:[#allocation1 + $0x20] sm:$0xff pattern:$0x75316420]  ;;  %158 = vst [vmem:[#allocation1 + $0x30] ss:$2 sm:$0xff] %v40_v60 }
  0x34   :  { %168 = vst [vmem:[#allocation1 + $0x20] ss:$2 sm:$0xff] %v44_v57  ;;  %1779 = vmatmul.msk.f32.vlgmr.msra.gmra.mxu3 %vm176_vm0, %v162_v59 }
  0x35   :  { %1766 = vmatmul.msk.f32.gmra.mxu0 %vm176_vm0, %v125_v32  ;;  %169 = vst [vmem:[#allocation1 + $0x21] ss:$2 sm:$0xff] %v45_v58 }
  0x36   :  { %159 = vst [vmem:[#allocation1 + $0x31] ss:$2 sm:$0xff] %v41_v53  ;;  %v161_v4 = vld.sshfl [vmem:[#allocation1 + $0x10] sm:$0xff pattern:$0x75316420] }
  0x37   :  { %166 = vst [vmem:[#allocation1 + $0x10] ss:$2 sm:$0xff] %v43_v2 }
  0x38   :  { %1775 = vmatmul.msk.f32.gmra.mxu2 %vm176_vm0, %v150_v49  ;;  %167 = vst [vmem:[#allocation1 + $0x11] ss:$2 sm:$0xff] %v93_v3 }
  0x39   :  { %1771 = vmatmul.msk.f32.gmra.mxu1 %vm176_vm0, %v138_v40  ;;  %v172_v63 = vld.sshfl [vmem:[#allocation1] sm:$0xff pattern:$0x75316420] }
  0x3c   :  { %v174_v9 = vld.sshfl [vmem:[#allocation1 + $0x20] sm:$0xff pattern:$0x75316420] }
  0x3d   :  { %v163_v62 = vld.sshfl [vmem:[#allocation1 + $0x30] sm:$0xff pattern:$0x75316420] }
  0x3e   :  { %1780 = vmatmul.msk.f32.gmra.mxu3 %vm176_vm0, %v163_v62  ;;  %170 = vst [vmem:[#allocation1 + $0x30] ss:$2 sm:$0xff] %v94_v8 }
  0x3f   :  { %v173_v5 = vld.sshfl [vmem:[#allocation1 + $0x10] sm:$0xff pattern:$0x75316420]  ;;  %171 = vst [vmem:[#allocation1 + $0x31] ss:$2 sm:$0xff] %v46_v11 }
  0x40   :  { %1776 = vmatmul.msk.f32.gmra.mxu2 %vm176_vm0, %v151_v61 }
  0x41   :  { %1772 = vmatmul.msk.f32.gmra.mxu1 %vm176_vm0, %v139_v51 }
  0x46   :  { %1781 = vmatmul.msk.f32.gmra.mxu3 %vm176_vm0, %v172_v63  ;;  %v175_v23 = vld.sshfl [vmem:[#allocation1 + $0x30] sm:$0xff pattern:$0x75316420] }
  0x48   :  { %1777 = vmatmul.msk.f32.gmra.mxu2 %vm176_vm0, %v160_v56 }
  0x4e   :  { %1782 = vmatmul.msk.f32.gmra.mxu3 %vm176_vm0, %v173_v5 }
  0x50   :  { %1778 = vmatmul.msk.f32.gmra.mxu2 %vm176_vm0, %v161_v4 }
  0x56   :  { %1783 = vmatmul.msk.f32.gmra.mxu3 %vm176_vm0, %v174_v9 }
  0x5e   :  { %1784 = vmatmul.msk.f32.gmra.mxu3 %vm176_vm0, %v175_v23 }
  0x8a   :  { %v2001_v6 = vpop.f32.mrf.mxu0 }
  0x8b   :  { %v2004_v7 = vrot.slane %v2001_v6, 4  ;;  %v1785_v12 = vrot.slane %v2001_v6, 9  ;;  %v1801_v20 = vrot.slane %v2001_v6, 10 }
  0x8d   :  { %v391_v13 = vrot.slane %v2004_v7, 5  ;;  %v1024_v15 = vrot.slane %v2004_v7, 6 }
  0x8f   :  { %v392_v14 = vsel %vm2006_vm3, %v1785_v12, %v391_v13  ;;  %v1026_v17 = vrot.slane %v1024_v15, 4  ;;  %v1025_v25 = vsel %vm2023_vm6, %v1801_v20, %v1024_v15  ;;  %v393_v28 = vrot.slane %v391_v13, 4 }
  0x90   :  { %517 = vrot.lane.b32.xlu0 %v392_v14, %s1855_s23 }
  0x92   :  { %v2020_v16 = vpop.f32.mrf.mxu0 }
  0x93   :  { %v1027_v18 = vrot.slane %v2020_v16, 6  ;;  %v394_v26 = vrot.slane %v2020_v16, 5  ;;  %v2045_v31 = vrot.slane %v2020_v16, 4 }
  0x95   :  { %v1028_v21 = vsel %vm2023_vm6, %v1026_v17, %v1027_v18  ;;  %v1029_v22 = vrot.slane %v1027_v18, 4  ;;  %v396_v27 = vrot.slane %v394_v26, 4  ;;  %v395_v34 = vsel %vm2006_vm3, %v393_v28, %v394_v26 }
  0x96   :  { %v2030_v24 = vpop.f32.mrf.mxu1  ;;  %1152 = vrot.lane.b32.xlu1 %v1028_v21, %s1856_s0  ;;  %v1786_v39 = vrot.slane %v2045_v31, 9  ;;  %v1802_v56 = vrot.slane %v2045_v31, 10 }
  0x97   :  { %1154 = vrot.lane.b32.xlu2 %v1029_v22, %s1856_s0  ;;  %v2048_v32 = vrot.slane %v2030_v24, 4  ;;  %v1789_v37 = vrot.slane %v2030_v24, 9  ;;  %v1805_v46 = vrot.slane %v2030_v24, 10 }
  0x98   :  { %1150 = vrot.lane.b32.xlu0 %v1025_v25, %s1856_s0 }
  0x99   :  { %v423_v40 = vrot.slane %v2048_v32, 5  ;;  %v1056_v47 = vrot.slane %v2048_v32, 6 }
  0x9a   :  { %v2039_v29 = vpop.f32.mrf.mxu0 }
  0x9b   :  { %v399_v35 = vrot.slane %v2039_v29, 5  ;;  %v424_v43 = vsel %vm2006_vm3, %v1789_v37, %v423_v40  ;;  %v425_v44 = vrot.slane %v423_v40, 4  ;;  %v2067_v45 = vrot.slane %v2039_v29, 4 }
  0x9c   :  { %v1057_v51 = vsel %vm2023_vm6, %v1805_v46, %v1056_v47  ;;  %v1058_v52 = vrot.slane %v1056_v47, 4  ;;  %v1032_v54 = vrot.slane %v2039_v29, 6 }
  0x9d   :  { %v400_v41 = vsel %vm2006_vm3, %v1786_v39, %v399_v35  ;;  %v401_v49 = vrot.slane %v399_v35, 4  ;;  %v402_v50 = vrot.slane %v2067_v45, 5  ;;  %v1035_v62 = vrot.slane %v2067_v45, 6 }
  0x9e   :  { %v2041_v30 = vpop.f32.mrf.mxu1  ;;  %521 = vrot.lane.b32.xlu1 %v396_v27, %s1855_s23  ;;  %v1033_v58 = vsel %vm2023_vm6, %v1802_v56, %v1032_v54  ;;  %v1034_v61 = vrot.slane %v1032_v54, 4 }
  0x9f   :  { %v426_v33 = vrot.slane %v2041_v30, 5  ;;  %v1059_v38 = vrot.slane %v2041_v30, 6  ;;  %v403_v53 = vsel %vm2006_vm3, %v401_v49, %v402_v50  ;;  %v2088_v57 = vrot.slane %v2041_v30, 4 }
  0xa0   :  { %519 = vrot.lane.b32.xlu0 %v395_v34, %s1855_s23  ;;  %v404_v60 = vrot.slane %v402_v50, 4  ;;  %v1036_v2 = vsel %vm2023_vm6, %v1034_v61, %v1035_v62  ;;  %v1037_v8 = vrot.slane %v1035_v62, 4 }
  0xa1   :  { %v428_v36 = vrot.slane %v426_v33, 4  ;;  %v1061_v42 = vrot.slane %v1059_v38, 4  ;;  %v427_v48 = vsel %vm2006_vm3, %v425_v44, %v426_v33  ;;  %v1060_v55 = vsel %vm2023_vm6, %v1058_v52, %v1059_v38 }
  0xa2   :  { %v1790_v1 = vrot.slane %v2088_v57, 9  ;;  %v1806_v12 = vrot.slane %v2088_v57, 10  ;;  %v2114_v13 = vpop.f32.mrf.mxu0 }
  0xa3   :  { %545 = vrot.lane.b32.xlu2 %v428_v36, %s1855_s23  ;;  %v2118_v14 = vrot.slane %v2114_v13, 4  ;;  %v1787_v21 = vrot.slane %v2114_v13, 9  ;;  %v1803_v34 = vrot.slane %v2114_v13, 10 }
  0xa5   :  { %v407_v22 = vrot.slane %v2118_v14, 5  ;;  %v1040_v35 = vrot.slane %v2118_v14, 6 }
  0xa6   :  { %523 = vrot.lane.b32.xlu1 %v400_v41, %s1855_s23  ;;  %v2092_v59 = vpop.f32.mrf.mxu1 }
  0xa7   :  { %v2097_v63 = vrot.slane %v2092_v59, 4  ;;  %v431_v0 = vrot.slane %v2092_v59, 5  ;;  %v1064_v9 = vrot.slane %v2092_v59, 6  ;;  %v408_v25 = vsel %vm2006_vm3, %v1787_v21, %v407_v22 }
  0xa8   :  { %541 = vrot.lane.b32.xlu0 %v424_v43, %s1855_s23  ;;  %v409_v33 = vrot.slane %v407_v22, 4  ;;  %v1041_v40 = vsel %vm2023_vm6, %v1803_v34, %v1040_v35 }
  0xa9   :  { %v432_v3 = vsel %vm2006_vm3, %v1790_v1, %v431_v0  ;;  %v433_v4 = vrot.slane %v431_v0, 4  ;;  %v434_v5 = vrot.slane %v2097_v63, 5  ;;  %v1065_v17 = vsel %vm2023_vm6, %v1806_v12, %v1064_v9 }
  0xaa   :  { %v1066_v18 = vrot.slane %v1064_v9, 4  ;;  %v1067_v20 = vrot.slane %v2097_v63, 6  ;;  %v2132_v26 = vpop.f32.mrf.mxu0 }
  0xab   :  { %1178 = vrot.lane.b32.xlu2 %v1061_v42, %s1856_s0  ;;  %v435_v11 = vsel %vm2006_vm3, %v433_v4, %v434_v5  ;;  %v436_v15 = vrot.slane %v434_v5, 4  ;;  %v410_v27 = vrot.slane %v2132_v26, 5  ;;  %v2141_v37 = vpop.f32.mrf.mxu2  ;;  %v1043_v41 = vrot.slane %v2132_v26, 6 }
  0xac   :  { %v1068_v23 = vsel %vm2023_vm6, %v1066_v18, %v1067_v20  ;;  %v1069_v28 = vrot.slane %v1067_v20, 4  ;;  %v2145_v38 = vrot.slane %v2141_v37, 4  ;;  %v1042_v42 = vrot.slane %v1040_v35, 4 }
  0xad   :  { %v411_v36 = vsel %vm2006_vm3, %v409_v33, %v410_v27  ;;  %v412_v39 = vrot.slane %v410_v27, 4  ;;  %v1793_v43 = vrot.slane %v2141_v37, 9  ;;  %v1045_v52 = vrot.slane %v1043_v41, 4 }
  0xae   :  { %543 = vrot.lane.b32.xlu1 %v427_v48, %s1855_s23  ;;  %v455_v44 = vrot.slane %v2145_v38, 5  ;;  %v1044_v46 = vsel %vm2023_vm6, %v1042_v42, %v1043_v41  ;;  %v2156_v47 = vpop.f32.mrf.mxu1  ;;  %v2187_v4 = vrot.slane %v2132_v26, 4 }
  0xaf   :  { %v2160_v48 = vrot.slane %v2156_v47, 4  ;;  %v1791_v54 = vrot.slane %v2156_v47, 9  ;;  %v1807_v1 = vrot.slane %v2156_v47, 10 }
  0xb0   :  { %1174 = vrot.lane.b32.xlu0 %v1057_v51, %s1856_s0  ;;  %v456_v49 = vsel %vm2006_vm3, %v1793_v43, %v455_v44  ;;  %v1788_v21 = vrot.slane %v2187_v4, 9 }
  0xb2   :  { %v2191_v9 = vpop.f32.mrf.mxu0 }
  0xb3   :  { %525 = vrot.lane.b32.xlu2 %v403_v53, %s1855_s23  ;;  %v2164_v50 = vpop.f32.mrf.mxu2  ;;  %v457_v53 = vrot.slane %v455_v44, 4  ;;  %v415_v18 = vrot.slane %v2191_v9, 5  ;;  %v1048_v41 = vrot.slane %v2191_v9, 6 }
  0xb4   :  { %v458_v51 = vrot.slane %v2164_v50, 5  ;;  %v1091_v10 = vrot.slane %v2164_v50, 6 }
  0xb5   :  { %v416_v27 = vsel %vm2006_vm3, %v1788_v21, %v415_v18  ;;  %v1050_v43 = vrot.slane %v1048_v41, 4 }
  0xb6   :  { %1176 = vrot.lane.b32.xlu1 %v1060_v55, %s1856_s0  ;;  %v439_v55 = vrot.slane %v2160_v48, 5  ;;  %v459_v56 = vsel %vm2006_vm3, %v457_v53, %v458_v51  ;;  %v2176_v61 = vpop.f32.mrf.mxu1 }
  0xb7   :  { %v442_v62 = vrot.slane %v2176_v61, 5  ;;  %v2260_v21 = vrot.slane %v2176_v61, 4 }
  0xb8   :  { %1156 = vrot.lane.b32.xlu0 %v1033_v58, %s1856_s0  ;;  %v460_v58 = vrot.slane %v458_v51, 4  ;;  %v441_v0 = vrot.slane %v439_v55, 4  ;;  %v1804_v51 = vrot.slane %v2187_v4, 10 }
  0xb9   :  { %v444_v5 = vrot.slane %v442_v62, 4 }
  0xbb   :  { %527 = vrot.lane.b32.xlu2 %v404_v60, %s1855_s23  ;;  %v440_v60 = vsel %vm2006_vm3, %v1791_v54, %v439_v55 }
  0xbe   :  { %1158 = vrot.lane.b32.xlu1 %v1036_v2, %s1856_s0  ;;  %v1072_v2 = vrot.slane %v2160_v48, 6 }
  0xc0   :  { %547 = vrot.lane.b32.xlu0 %v432_v3, %s1855_s23  ;;  %v443_v3 = vsel %vm2006_vm3, %v441_v0, %v442_v62  ;;  %v1074_v12 = vrot.slane %v1072_v2, 4 }
  0xc3   :  { %1160 = vrot.lane.b32.xlu2 %v1037_v8, %s1856_s0  ;;  %v1073_v8 = vsel %vm2023_vm6, %v1807_v1, %v1072_v2 }
  0xc6   :  { %549 = vrot.lane.b32.xlu1 %v435_v11, %s1855_s23  ;;  %v1075_v11 = vrot.slane %v2176_v61, 6 }
  0xc8   :  { %1180 = vrot.lane.b32.xlu0 %v1065_v17, %s1856_s0  ;;  %v2198_v17 = vrot.slane %v2191_v9, 4  ;;  %v1076_v22 = vsel %vm2023_vm6, %v1074_v12, %v1075_v11  ;;  %v1077_v33 = vrot.slane %v1075_v11, 4 }
  0xca   :  { %v1051_v44 = vrot.slane %v2198_v17, 6 }
  0xcb   :  { %551 = vrot.lane.b32.xlu2 %v436_v15, %s1855_s23  ;;  %v2195_v15 = vpop.f32.mrf.mxu3 }
  0xcc   :  { %v1797_v34 = vrot.slane %v2195_v15, 9  ;;  %v1052_v54 = vsel %vm2023_vm6, %v1050_v43, %v1051_v44  ;;  %v1053_v0 = vrot.slane %v1051_v44, 4  ;;  %v1792_v44 = vrot.slane %v2260_v21, 9 }
  0xce   :  { %1182 = vrot.lane.b32.xlu1 %v1068_v23, %s1856_s0  ;;  %v2208_v23 = vrot.slane %v2195_v15, 4 }
  0xd0   :  { %529 = vrot.lane.b32.xlu0 %v408_v25, %s1855_s23  ;;  %v417_v25 = vrot.slane %v415_v18, 4  ;;  %v487_v35 = vrot.slane %v2208_v23, 5 }
  0xd2   :  { %v489_v1 = vrot.slane %v487_v35, 4 }
  0xd3   :  { %1184 = vrot.lane.b32.xlu2 %v1069_v28, %s1856_s0  ;;  %v418_v28 = vrot.slane %v2198_v17, 5 }
  0xd5   :  { %v420_v42 = vrot.slane %v418_v28, 4 }
  0xd6   :  { %531 = vrot.lane.b32.xlu1 %v411_v36, %s1855_s23  ;;  %v419_v36 = vsel %vm2006_vm3, %v417_v25, %v418_v28  ;;  %v2266_v25 = vpop.f32.mrf.mxu1 }
  0xd8   :  { %1162 = vrot.lane.b32.xlu0 %v1041_v40, %s1856_s0  ;;  %v488_v40 = vsel %vm2006_vm3, %v1797_v34, %v487_v35 }
  0xdb   :  { %533 = vrot.lane.b32.xlu2 %v412_v39, %s1855_s23 }
  0xde   :  { %1164 = vrot.lane.b32.xlu1 %v1044_v46, %s1856_s0 }
  0xe0   :  { %565 = vrot.lane.b32.xlu0 %v456_v49, %s1855_s23 }
  0xe3   :  { %1166 = vrot.lane.b32.xlu2 %v1045_v52, %s1856_s0 }
  0xe6   :  { %567 = vrot.lane.b32.xlu1 %v459_v56, %s1855_s23  ;;  %v2237_v56 = vpop.f32.mrf.mxu3 }
  0xe7   :  { %v490_v62 = vrot.slane %v2237_v56, 5 }
  0xe8   :  { %553 = vrot.lane.b32.xlu0 %v440_v60, %s1855_s23 }
  0xe9   :  { %v491_v18 = vsel %vm2006_vm3, %v489_v1, %v490_v62 }
  0xeb   :  { %569 = vrot.lane.b32.xlu2 %v460_v58, %s1855_s23  ;;  %v2241_v58 = vrot.slane %v2164_v50, 4 }
  0xed   :  { %v1794_v11 = vrot.slane %v2241_v58, 9 }
  0xee   :  { %555 = vrot.lane.b32.xlu1 %v443_v3, %s1855_s23 }
  0xf0   :  { %1186 = vrot.lane.b32.xlu0 %v1073_v8, %s1856_s0 }
  0xf1   :  { %v2202_v20 = vpop.permute.xlu2 %1154 }
  0xf3   :  { %557 = vrot.lane.b32.xlu2 %v444_v5, %s1855_s23 }
  0xf6   :  { %1188 = vrot.lane.b32.xlu1 %v1076_v22, %s1856_s0 }
  0xf8   :  { %535 = vrot.lane.b32.xlu0 %v416_v27, %s1855_s23  ;;  %v492_v27 = vrot.slane %v490_v62, 4 }
  0xfb   :  { %1190 = vrot.lane.b32.xlu2 %v1077_v33, %s1856_s0 }
  0xfd   :  { %v546_v39 = vpop.permute.xlu2 %545 }
  0xfe   :  { %537 = vrot.lane.b32.xlu1 %v419_v36, %s1855_s23  ;;  %v2230_v52 = vadd.f32 %v546_v39, %v2041_v30  ;;  %v2245_v30 = vpop.f32.mrf.mxu2  ;;  %v447_v39 = vrot.slane %v2266_v25, 5 }
  0xff   :  { %v2250_v3 = vrot.slane %v2245_v30, 4  ;;  %v463_v5 = vrot.slane %v2245_v30, 5 }
 0x100   :  { %589 = vrot.lane.b32.xlu0 %v488_v40, %s1855_s23 }
 0x101   :  { %v464_v28 = vsel %vm2006_vm3, %v1794_v11, %v463_v5  ;;  %v465_v33 = vrot.slane %v463_v5, 4  ;;  %v466_v34 = vrot.slane %v2250_v3, 5 }
 0x102   :  { %v518_v46 = vpop.permute.xlu0 %517 }
 0x103   :  { %539 = vrot.lane.b32.xlu2 %v420_v42, %s1855_s23  ;;  %v661_v49 = vadd.f32 %v518_v46, %v2001_v6  ;;  %v1049_v6 = vsel %vm2023_vm6, %v1804_v51, %v1048_v41  ;;  %v467_v43 = vsel %vm2006_vm3, %v465_v33, %v466_v34 }
 0x105   :  { %v1179_v53 = vpop.permute.xlu2 %1178  ;;  %757 = vst [vmem:[#allocation1] ss:$2 sm:$0xff] %v661_v49 }
 0x106   :  { %v2235_v55 = vadd.f32 %v1179_v53, %v2230_v52  ;;  %1170 = vrot.lane.b32.xlu1 %v1052_v54, %s1856_s0  ;;  %v2293_v53 = vpop.f32.mrf.mxu3  ;;  %v448_v54 = vsel %vm2006_vm3, %v1792_v44, %v447_v39  ;;  %v2306_v5 = vpop.f32.mrf.mxu2 }
 0x108   :  { %v1153_v60 = vpop.permute.xlu1 %1152  ;;  %1168 = vrot.lane.b32.xlu0 %v1049_v6, %s1856_s0 }
 0x10a   :  { %v1151_v2 = vpop.permute.xlu0 %1150 }
 0x10b   :  { %1172 = vrot.lane.b32.xlu2 %v1053_v0, %s1856_s0  ;;  %v2254_v8 = vadd.f32 %v1151_v2, %v661_v49  ;;  %v2289_v49 = vrot.slane %v2237_v56, 4  ;;  %v495_v0 = vrot.slane %v2293_v53, 5  ;;  %v2303_v2 = vrot.slane %v2293_v53, 4 }
 0x10d   :  { %v526_v12 = vpop.permute.xlu2 %525  ;;  %v1798_v1 = vrot.slane %v2289_v49, 9  ;;  %v497_v33 = vrot.slane %v495_v0, 4 }
 0x10e   :  { %v2263_v22 = vadd.f32 %v526_v12, %v2039_v29  ;;  %591 = vrot.lane.b32.xlu1 %v491_v18, %s1855_s23  ;;  %v2275_v29 = vrot.slane %v2266_v25, 4 }
 0x110   :  { %767 = vst [vmem:[#allocation1 + $0x21] ss:$2 sm:$0xff] %v2263_v22  ;;  %v522_v35 = vpop.permute.xlu1 %521  ;;  %571 = vrot.lane.b32.xlu0 %v464_v28, %s1855_s23  ;;  %v450_v6 = vrot.slane %v2275_v29, 5 }
 0x111   :  { %v663_v36 = vadd.f32 %v522_v35, %v2020_v16 }
 0x112   :  { %v520_v40 = vpop.permute.xlu0 %519  ;;  %v452_v28 = vrot.slane %v450_v6, 4 }
 0x113   :  { %593 = vrot.lane.b32.xlu2 %v492_v27, %s1855_s23  ;;  %761 = vst [vmem:[#allocation1 + $0x10] ss:$2 sm:$0xff] %v663_v36  ;;  %v2280_v41 = vadd.f32 %v2202_v20, %v663_v36  ;;  %v662_v42 = vadd.f32 %v520_v40, %v2004_v7  ;;  %v449_v20 = vrot.slane %v447_v39, 4  ;;  %v468_v7 = vrot.slane %v466_v34, 4 }
 0x114   :  { %v2316_v27 = vrot.slane %v2306_v5, 4  ;;  %v498_v34 = vrot.slane %v2303_v2, 5  ;;  %v1795_v40 = vrot.slane %v2306_v5, 9 }
 0x115   :  { %v528_v16 = vpop.permute.xlu2 %527  ;;  %759 = vst [vmem:[#allocation1 + $0x1] ss:$2 sm:$0xff] %v662_v42  ;;  %v2286_v46 = vadd.f32 %v1153_v60, %v662_v42  ;;  %v451_v11 = vsel %vm2006_vm3, %v449_v20, %v450_v6  ;;  %v2333_v20 = vpop.f32.mrf.mxu3 }
 0x116   :  { %v666_v51 = vadd.f32 %v528_v16, %v2067_v45  ;;  %573 = vrot.lane.b32.xlu1 %v467_v43, %s1855_s23  ;;  %v499_v43 = vsel %vm2006_vm3, %v497_v33, %v498_v34  ;;  %v471_v44 = vrot.slane %v2316_v27, 5 }
 0x118   :  { %769 = vst [vmem:[#allocation1 + $0x30] ss:$2 sm:$0xff] %v666_v51  ;;  %v524_v62 = vpop.permute.xlu1 %523  ;;  %559 = vrot.lane.b32.xlu0 %v448_v54, %s1855_s23  ;;  %v500_v54 = vrot.slane %v498_v34, 4  ;;  %v472_v6 = vsel %vm2006_vm3, %v1795_v40, %v471_v44 }
 0x119   :  { %v664_v60 = vadd.f32 %v524_v62, %v2045_v31  ;;  %v496_v31 = vsel %vm2006_vm3, %v1798_v1, %v495_v0  ;;  %v473_v1 = vrot.slane %v471_v44, 4 }
 0x11a   :  { %v542_v45 = vpop.permute.xlu0 %541 }
 0x11b   :  { %575 = vrot.lane.b32.xlu2 %v468_v7, %s1855_s23  ;;  %765 = vst [vmem:[#allocation1 + $0x20] ss:$2 sm:$0xff] %v664_v60  ;;  %v2321_v36 = vadd.f32 %v542_v45, %v2030_v24  ;;  %v2340_v7 = vrot.slane %v2333_v20, 4 }
 0x11d   :  { %v1161_v12 = vpop.permute.xlu2 %1160 }
 0x11e   :  { %v2310_v18 = vadd.f32 %v1161_v12, %v666_v51  ;;  %561 = vrot.lane.b32.xlu1 %v451_v11, %s1855_s23  ;;  %v2331_v51 = vpop.f32.mrf.mxu2 }
 0x11f   :  { %v474_v0 = vrot.slane %v2331_v51, 5 }
 0x120   :  { %v544_v35 = vpop.permute.xlu1 %543  ;;  %595 = vrot.lane.b32.xlu0 %v496_v31, %s1855_s23  ;;  %v503_v31 = vrot.slane %v2340_v7, 5 }
 0x121   :  { %v2337_v24 = vadd.f32 %v544_v35, %v2048_v32  ;;  %v1799_v32 = vrot.slane %v2333_v20, 9  ;;  %v475_v34 = vsel %vm2006_vm3, %v473_v1, %v474_v0 }
 0x122   :  { %v1175_v39 = vpop.permute.xlu0 %1174 }
 0x123   :  { %563 = vrot.lane.b32.xlu2 %v452_v28, %s1855_s23  ;;  %v2326_v42 = vadd.f32 %v1175_v39, %v2321_v36  ;;  %v2364_v39 = vrot.slane %v2331_v51, 4 }
 0x125   :  { %3005 = vst [vmem:[#allocation5_spill] sm:$0xff] %v2326_v42  ;;  %v552_v16 = vpop.permute.xlu2 %551 }
 0x126   :  { %597 = vrot.lane.b32.xlu1 %v499_v43, %s1855_s23  ;;  %v2355_v28 = vadd.f32 %v552_v16, %v2097_v63  ;;  %v2366_v40 = vpop.f32.mrf.mxu2  ;;  %v504_v43 = vsel %vm2006_vm3, %v1799_v32, %v503_v31  ;;  %v2370_v63 = vpop.f32.mrf.mxu3 }
 0x127   :  { %v506_v16 = vrot.slane %v2370_v63, 5  ;;  %v2380_v1 = vrot.slane %v2366_v40, 4 }
 0x128   :  { %v1177_v62 = vpop.permute.xlu1 %1176  ;;  %577 = vrot.lane.b32.xlu0 %v472_v6, %s1855_s23  ;;  %v505_v6 = vrot.slane %v503_v31, 4 }
 0x129   :  { %v2347_v45 = vadd.f32 %v1177_v62, %v2337_v24 }
 0x12a   :  { %v1157_v11 = vpop.permute.xlu0 %1156 }
 0x12b   :  { %3006 = vst [vmem:[#allocation6_spill] sm:$0xff] %v2347_v45  ;;  %599 = vrot.lane.b32.xlu2 %v500_v54, %s1855_s23  ;;  %v2351_v12 = vadd.f32 %v1157_v11, %v664_v60  ;;  %v476_v60 = vrot.slane %v474_v0, 4  ;;  %v479_v0 = vrot.slane %v2366_v40, 5  ;;  %v1796_v11 = vrot.slane %v2364_v39, 9 }
 0x12c   :  { %v482_v45 = vrot.slane %v2380_v1, 5 }
 0x12d   :  { %3007 = vst [vmem:[#allocation7_spill] sm:$0xff] %v2351_v12  ;;  %v1185_v33 = vpop.permute.xlu2 %1184  ;;  %v481_v31 = vrot.slane %v479_v0, 4  ;;  %v1809_v12 = vrot.slane %v2141_v37, 10 }
 0x12e   :  { %v2360_v35 = vadd.f32 %v1185_v33, %v2355_v28  ;;  %579 = vrot.lane.b32.xlu1 %v475_v34, %s1855_s23  ;;  %v507_v33 = vsel %vm2006_vm3, %v505_v6, %v506_v16  ;;  %v1080_v6 = vrot.slane %v2266_v25, 6 }
 0x130   :  { %3008 = vst [vmem:[#allocation8_spill] sm:$0xff] %v2360_v35  ;;  %v1159_v44 = vpop.permute.xlu1 %1158  ;;  %601 = vrot.lane.b32.xlu0 %v504_v43, %s1855_s23  ;;  %v508_v43 = vrot.slane %v506_v16, 4  ;;  %v1808_v16 = vrot.slane %v2260_v21, 10 }
 0x131   :  { %v2375_v54 = vadd.f32 %v1159_v44, %v2263_v22  ;;  %v2389_v22 = vld.sshfl [vmem:[#allocation1 + $0x10] sm:$0xff pattern:$0x75316420]  ;;  %v480_v44 = vsel %vm2006_vm3, %v1796_v11, %v479_v0  ;;  %v2406_v0 = vrot.slane %v2370_v63, 4 }
 0x132   :  { %v2377_v62 = vpop.permute.xlu0 %547  ;;  %3010 = vst [vmem:[#allocation10_spill] sm:$0xff] %v2389_v22  ;;  %v484_v22 = vrot.slane %v482_v45, 4 }
 0x133   :  { %3009 = vst [vmem:[#allocation9_spill] sm:$0xff] %v2375_v54  ;;  %581 = vrot.lane.b32.xlu2 %v476_v60, %s1855_s23 }
 0x135   :  { %v534_v32 = vpop.permute.xlu2 %533 }
 0x136   :  { %v669_v34 = vadd.f32 %v534_v32, %v2132_v26  ;;  %603 = vrot.lane.b32.xlu1 %v507_v33, %s1855_s23  ;;  %v483_v26 = vsel %vm2006_vm3, %v481_v31, %v482_v45  ;;  %v2416_v31 = vpop.f32.mrf.mxu3 }
 0x137   :  { %v511_v45 = vrot.slane %v2416_v31, 5 }
 0x138   :  { %774 = vst [vmem:[#allocation1 + $0x10] ss:$2 sm:$0xff] %v669_v34  ;;  %v550_v60 = vpop.permute.xlu1 %549  ;;  %583 = vrot.lane.b32.xlu0 %v480_v44, %s1855_s23 }
 0x139   :  { %v2411_v44 = vadd.f32 %v550_v60, %v2092_v59  ;;  %v2424_v59 = vrot.slane %v2416_v31, 4  ;;  %v1800_v60 = vrot.slane %v2406_v0, 9 }
 0x13a   :  { %v2395_v42 = vpop.permute.xlu0 %1180 }
 0x13b   :  { %3011 = vst [vmem:[#allocation11_spill] sm:$0xff] %v2395_v42  ;;  %605 = vrot.lane.b32.xlu2 %v508_v43, %s1855_s23  ;;  %v1081_v43 = vsel %vm2023_vm6, %v1808_v16, %v1080_v6  ;;  %v2430_v16 = vld.sshfl [vmem:[#allocation1] sm:$0xff pattern:$0x75316420]  ;;  %v514_v54 = vrot.slane %v2424_v59, 5 }
 0x13c   :  { %3014 = vst [vmem:[#allocation14_spill] sm:$0xff] %v2430_v16 }
 0x13d   :  { %v1167_v32 = vpop.permute.xlu2 %1166 }
 0x13e   :  { %v2402_v33 = vadd.f32 %v1167_v32, %v669_v34  ;;  %585 = vrot.lane.b32.xlu1 %v483_v26, %s1855_s23  ;;  %v1082_v26 = vrot.slane %v1080_v6, 4 }
 0x13f   :  { %v2408_v11 = vld.sshfl [vmem:[#allocation1 + $0x10] sm:$0xff pattern:$0x75316420] }
 0x140   :  { %3012 = vst [vmem:[#allocation12_spill] sm:$0xff] %v2408_v11  ;;  %v1183_v34 = vpop.permute.xlu1 %1182  ;;  %1192 = vrot.lane.b32.xlu0 %v1081_v43, %s1856_s0  ;;  %v1083_v11 = vrot.slane %v2275_v29, 6 }
 0x141   :  { %784 = vst [vmem:[#allocation1 + $0x10] ss:$2 sm:$0xff] %v2230_v52  ;;  %v2420_v32 = vadd.f32 %v1183_v34, %v2411_v44  ;;  %v513_v34 = vrot.slane %v511_v45, 4 }
 0x142   :  { %v530_v42 = vpop.permute.xlu0 %529  ;;  %v1084_v43 = vsel %vm2023_vm6, %v1082_v26, %v1083_v11 }
 0x143   :  { %3013 = vst [vmem:[#allocation13_spill] sm:$0xff] %v2420_v32  ;;  %587 = vrot.lane.b32.xlu2 %v484_v22, %s1855_s23  ;;  %v667_v52 = vadd.f32 %v530_v42, %v2114_v13  ;;  %v512_v32 = vsel %vm2006_vm3, %v1800_v60, %v511_v45  ;;  %v1085_v13 = vrot.slane %v1083_v11, 4  ;;  %v1088_v45 = vrot.slane %v2145_v38, 6 }
 0x145   :  { %v570_v6 = vpop.permute.xlu2 %569  ;;  %772 = vst [vmem:[#allocation1] ss:$2 sm:$0xff] %v667_v52 }
 0x146   :  { %1194 = vrot.lane.b32.xlu1 %v1084_v43, %s1856_s0  ;;  %v515_v43 = vsel %vm2006_vm3, %v513_v34, %v514_v54 }
 0x148   :  { %v532_v22 = vpop.permute.xlu1 %531  ;;  %607 = vrot.lane.b32.xlu0 %v512_v32, %s1855_s23  ;;  %v2449_v11 = vld.sshfl [vmem:[#allocation1 + $0x10] sm:$0xff pattern:$0x75316420]  ;;  %v1089_v32 = vsel %vm2023_vm6, %v1809_v12, %v1088_v45  ;;  %v1810_v12 = vrot.slane %v2241_v58, 10 }
 0x149   :  { %v668_v42 = vadd.f32 %v532_v22, %v2118_v14  ;;  %3015 = vst [vmem:[#allocation15_spill] sm:$0xff] %v2449_v11  ;;  %v516_v14 = vrot.slane %v514_v54, 4 }
 0x14a   :  { %v1163_v16 = vpop.permute.xlu0 %1162 }
 0x14b   :  { %1196 = vrot.lane.b32.xlu2 %v1085_v13, %s1856_s0  ;;  %773 = vst [vmem:[#allocation1 + $0x1] ss:$2 sm:$0xff] %v668_v42  ;;  %v2442_v26 = vadd.f32 %v1163_v16, %v667_v52  ;;  %v1090_v16 = vrot.slane %v1088_v45, 4  ;;  %v1096_v13 = vrot.slane %v2245_v30, 6 }
 0x14d   :  { %v558_v60 = vpop.permute.xlu2 %557 }
 0x14e   :  { %v681_v35 = vadd.f32 %v558_v60, %v2176_v61  ;;  %609 = vrot.lane.b32.xlu1 %v515_v43, %s1855_s23  ;;  %v1092_v43 = vsel %vm2023_vm6, %v1090_v16, %v1091_v10  ;;  %v1104_v16 = vrot.slane %v2316_v27, 6 }
 0x150   :  { %794 = vst [vmem:[#allocation1 + $0x10] ss:$2 sm:$0xff] %v681_v35  ;;  %v1165_v22 = vpop.permute.xlu1 %1164  ;;  %1198 = vrot.lane.b32.xlu0 %v1089_v32, %s1856_s0  ;;  %v1098_v32 = vrot.slane %v1096_v13, 4  ;;  %v1106_v11 = vrot.slane %v1104_v16, 4 }
 0x151   :  { %v2455_v52 = vadd.f32 %v1165_v22, %v668_v42  ;;  %v2467_v42 = vadd.f32 %v570_v6, %v2164_v50  ;;  %v1099_v22 = vrot.slane %v2250_v3, 6 }
 0x152   :  { %v2457_v34 = vld.sshfl [vmem:[#allocation1] sm:$0xff pattern:$0x75316420]  ;;  %v566_v61 = vpop.permute.xlu0 %565 }
 0x153   :  { %3016 = vst [vmem:[#allocation16_spill] sm:$0xff] %v2457_v34  ;;  %611 = vrot.lane.b32.xlu2 %v516_v14, %s1855_s23 }
 0x154   :  { %783 = vst [vmem:[#allocation1 + $0x1] ss:$2 sm:$0xff] %v2337_v24  ;;  %v1097_v24 = vsel %vm2023_vm6, %v1810_v12, %v1096_v13  ;;  %v2489_v13 = vld.sshfl [vmem:[#allocation1 + $0x30] sm:$0xff pattern:$0x75316420] }
 0x155   :  { %782 = vst [vmem:[#allocation1] ss:$2 sm:$0xff] %v2321_v36  ;;  %v1191_v54 = vpop.permute.xlu2 %1190  ;;  %v1093_v36 = vrot.slane %v1091_v10, 4 }
 0x156   :  { %v2469_v45 = vadd.f32 %v1191_v54, %v681_v35  ;;  %1200 = vrot.lane.b32.xlu1 %v1092_v43, %s1856_s0  ;;  %v1811_v35 = vrot.slane %v2306_v5, 10  ;;  %v1100_v43 = vsel %vm2023_vm6, %v1098_v32, %v1099_v22  ;;  %3019 = vst [vmem:[#allocation19_spill] sm:$0xff] %v2489_v13 }
 0x157   :  { %v2472_v60 = vld.sshfl [vmem:[#allocation1 + $0x10] sm:$0xff pattern:$0x75316420] }
 0x158   :  { %3017 = vst [vmem:[#allocation17_spill] sm:$0xff] %v2472_v60  ;;  %v568_v14 = vpop.permute.xlu1 %567  ;;  %1204 = vrot.lane.b32.xlu0 %v1097_v24, %s1856_s0  ;;  %v1105_v24 = vsel %vm2023_vm6, %v1811_v35, %v1104_v16  ;;  %v1812_v35 = vrot.slane %v2364_v39, 10 }
 0x159   :  { %804 = vst [vmem:[#allocation1 + $0x10] ss:$2 sm:$0xff] %v2467_v42 }
 0x15a   :  { %v554_v50 = vpop.permute.xlu0 %553 }
 0x15b   :  { %1202 = vrot.lane.b32.xlu2 %v1093_v36, %s1856_s0  ;;  %v679_v6 = vadd.f32 %v554_v50, %v2156_v47  ;;  %v1107_v36 = vrot.slane %v2331_v51, 6  ;;  %v1101_v50 = vrot.slane %v1099_v22, 4 }
 0x15c   :  { %v2483_v54 = vld.sshfl [vmem:[#allocation1] sm:$0xff pattern:$0x75316420] }
 0x15d   :  { %3018 = vst [vmem:[#allocation18_spill] sm:$0xff] %v2483_v54  ;;  %v540_v12 = vpop.permute.xlu2 %539  ;;  %v1109_v16 = vrot.slane %v1107_v36, 4 }
 0x15e   :  { %792 = vst [vmem:[#allocation1] ss:$2 sm:$0xff] %v679_v6  ;;  %v672_v10 = vadd.f32 %v540_v12, %v2198_v17  ;;  %1206 = vrot.lane.b32.xlu1 %v1100_v43, %s1856_s0  ;;  %v1112_v17 = vrot.slane %v2366_v40, 6 }
 0x160   :  { %779 = vst [vmem:[#allocation1 + $0x30] ss:$2 sm:$0xff] %v672_v10  ;;  %v556_v47 = vpop.permute.xlu1 %555  ;;  %1210 = vrot.lane.b32.xlu0 %v1105_v24, %s1856_s0  ;;  %v1108_v24 = vsel %vm2023_vm6, %v1106_v11, %v1107_v36  ;;  %v1113_v22 = vsel %vm2023_vm6, %v1812_v35, %v1112_v17 }
 0x161   :  { %v680_v60 = vadd.f32 %v556_v47, %v2160_v48  ;;  %v1114_v47 = vrot.slane %v1112_v17, 4 }
 0x162   :  { %v1187_v32 = vpop.permute.xlu0 %1186 }
 0x163   :  { %1208 = vrot.lane.b32.xlu2 %v1101_v50, %s1856_s0  ;;  %793 = vst [vmem:[#allocation1 + $0x1] ss:$2 sm:$0xff] %v680_v60  ;;  %v2498_v12 = vadd.f32 %v1187_v32, %v679_v6  ;;  %v2513_v50 = vadd.f32 %v568_v14, %v2145_v38  ;;  %v2519_v32 = vadd.f32 %v566_v61, %v2141_v37  ;;  %v1120_v38 = vrot.slane %v2208_v23, 6 }
 0x165   :  { %v1173_v43 = vpop.permute.xlu2 %1172 }
 0x166   :  { %v2503_v54 = vadd.f32 %v1173_v43, %v672_v10  ;;  %1212 = vrot.lane.b32.xlu1 %v1108_v24, %s1856_s0  ;;  %v1115_v10 = vrot.slane %v2380_v1, 6 }
 0x167   :  { %v2506_v48 = vld.sshfl [vmem:[#allocation1 + $0x30] sm:$0xff pattern:$0x75316420] }
 0x168   :  { %3020 = vst [vmem:[#allocation20_spill] sm:$0xff] %v2506_v48  ;;  %v1189_v6 = vpop.permute.xlu1 %1188  ;;  %1216 = vrot.lane.b32.xlu0 %v1113_v22, %s1856_s0  ;;  %v1116_v37 = vsel %vm2023_vm6, %v1114_v47, %v1115_v10  ;;  %v1117_v24 = vrot.slane %v1115_v10, 4  ;;  %v1814_v47 = vrot.slane %v2289_v49, 10 }
 0x169   :  { %789 = vst [vmem:[#allocation1 + $0x30] ss:$2 sm:$0xff] %v2355_v28  ;;  %v2515_v11 = vadd.f32 %v1189_v6, %v680_v60  ;;  %v1813_v28 = vrot.slane %v2195_v15, 10  ;;  %v2528_v60 = vld.sshfl [vmem:[#allocation1 + $0x20] sm:$0xff pattern:$0x75316420] }
 0x16a   :  { %v2521_v43 = vld.sshfl [vmem:[#allocation1] sm:$0xff pattern:$0x75316420]  ;;  %v536_v35 = vpop.permute.xlu0 %535  ;;  %3022 = vst [vmem:[#allocation22_spill] sm:$0xff] %v2528_v60 }
 0x16b   :  { %3021 = vst [vmem:[#allocation21_spill] sm:$0xff] %v2521_v43  ;;  %1214 = vrot.lane.b32.xlu2 %v1109_v16, %s1856_s0  ;;  %v670_v36 = vadd.f32 %v536_v35, %v2187_v4  ;;  %v1121_v61 = vsel %vm2023_vm6, %v1813_v28, %v1120_v38  ;;  %v1123_v4 = vrot.slane %v2237_v56, 6  ;;  %v1122_v16 = vrot.slane %v1120_v38, 4 }
 0x16c   :  { %803 = vst [vmem:[#allocation1 + $0x1] ss:$2 sm:$0xff] %v2513_v50  ;;  %v1128_v35 = vrot.slane %v2293_v53, 6  ;;  %v2557_v43 = vadd.f32 %v2377_v62, %v2088_v57 }
 0x16d   :  { %802 = vst [vmem:[#allocation1] ss:$2 sm:$0xff] %v2519_v32  ;;  %v2531_v14 = vpop.permute.xlu2 %593  ;;  %v1124_v28 = vsel %vm2023_vm6, %v1122_v16, %v1123_v4  ;;  %v1125_v38 = vrot.slane %v1123_v4, 4  ;;  %v1136_v4 = vrot.slane %v2340_v7, 6 }
 0x16e   :  { %777 = vst [vmem:[#allocation1 + $0x20] ss:$2 sm:$0xff] %v670_v36  ;;  %1218 = vrot.lane.b32.xlu1 %v1116_v37, %s1856_s0  ;;  %v1129_v10 = vsel %vm2023_vm6, %v1814_v47, %v1128_v35 }
 0x170   :  { %v538_v17 = vpop.permute.xlu1 %537  ;;  %1222 = vrot.lane.b32.xlu0 %v1121_v61, %s1856_s0 }
 0x171   :  { %v671_v22 = vadd.f32 %v538_v17, %v2191_v9  ;;  %v1130_v17 = vrot.slane %v1128_v35, 4  ;;  %v2574_v35 = vld.sshfl [vmem:[#allocation1 + $0x30] sm:$0xff pattern:$0x75316420] }
 0x172   :  { %v2541_v6 = vpop.permute.xlu0 %589  ;;  %3024 = vst [vmem:[#allocation24_spill] sm:$0xff] %v2574_v35 }
 0x173   :  { %1220 = vrot.lane.b32.xlu2 %v1117_v24, %s1856_s0  ;;  %778 = vst [vmem:[#allocation1 + $0x21] ss:$2 sm:$0xff] %v671_v22  ;;  %v1131_v24 = vrot.slane %v2303_v2, 6 }
 0x175   :  { %v576_v37 = vpop.permute.xlu2 %575  ;;  %v1132_v57 = vsel %vm2023_vm6, %v1130_v17, %v1131_v24 }
 0x176   :  { %1224 = vrot.lane.b32.xlu1 %v1124_v28, %s1856_s0  ;;  %v1815_v28 = vrot.slane %v2333_v20, 10 }
 0x178   :  { %v1171_v9 = vpop.permute.xlu1 %1170  ;;  %1228 = vrot.lane.b32.xlu0 %v1129_v10, %s1856_s0  ;;  %v1139_v10 = vrot.slane %v2370_v63, 6 }
 0x179   :  { %v2552_v61 = vadd.f32 %v1171_v9, %v671_v22  ;;  %v1133_v9 = vrot.slane %v1131_v24, 4 }
 0x17a   :  { %v2559_v48 = vld.sshfl [vmem:[#allocation1 + $0x20] sm:$0xff pattern:$0x75316420]  ;;  %v1169_v16 = vpop.permute.xlu0 %1168  ;;  %v1141_v35 = vrot.slane %v1139_v10, 4 }
 0x17b   :  { %3023 = vst [vmem:[#allocation23_spill] sm:$0xff] %v2559_v48  ;;  %1226 = vrot.lane.b32.xlu2 %v1125_v38, %s1856_s0  ;;  %v2564_v47 = vadd.f32 %v1169_v16, %v670_v36  ;;  %v1138_v38 = vrot.slane %v1136_v4, 4  ;;  %v1816_v16 = vrot.slane %v2406_v0, 10  ;;  %v1147_v48 = vrot.slane %v2424_v59, 6 }
 0x17c   :  { %788 = vst [vmem:[#allocation1 + $0x21] ss:$2 sm:$0xff] %v2411_v44  ;;  %v1137_v44 = vsel %vm2023_vm6, %v1815_v28, %v1136_v4 }
 0x17d   :  { %787 = vst [vmem:[#allocation1 + $0x20] ss:$2 sm:$0xff] %v2557_v43  ;;  %v564_v22 = vpop.permute.xlu2 %563  ;;  %v1140_v28 = vsel %vm2023_vm6, %v1138_v38, %v1139_v10  ;;  %v2612_v10 = vld.sshfl [vmem:[#allocation1 + $0x10] sm:$0xff pattern:$0x75316420] }
 0x17e   :  { %v2571_v62 = vadd.f32 %v564_v22, %v2275_v29  ;;  %1230 = vrot.lane.b32.xlu1 %v1132_v57, %s1856_s0  ;;  %v1144_v29 = vrot.slane %v2416_v31, 6  ;;  %v2589_v57 = vadd.f32 %v576_v37, %v2250_v3 }
 0x180   :  { %799 = vst [vmem:[#allocation1 + $0x30] ss:$2 sm:$0xff] %v2571_v62  ;;  %v2579_v36 = vpop.permute.xlu1 %591  ;;  %1234 = vrot.lane.b32.xlu0 %v1137_v44, %s1856_s0  ;;  %v1145_v24 = vsel %vm2023_vm6, %v1816_v16, %v1144_v29 }
 0x182   :  { %v572_v17 = vpop.permute.xlu0 %571 }
 0x183   :  { %1232 = vrot.lane.b32.xlu2 %v1133_v9, %s1856_s0  ;;  %v1146_v9 = vrot.slane %v1144_v29, 4 }
 0x184   :  { %v2603_v37 = vld.sshfl [vmem:[#allocation1 + $0x20] sm:$0xff pattern:$0x75316420] }
 0x185   :  { %v600_v22 = vpop.permute.xlu2 %599  ;;  %3026 = vst [vmem:[#allocation26_spill] sm:$0xff] %v2603_v37  ;;  %v1148_v16 = vsel %vm2023_vm6, %v1146_v9, %v1147_v48  ;;  %v2669_v37 = vadd.f32 %v2541_v6, %v2195_v15 }
 0x186   :  { %1236 = vrot.lane.b32.xlu1 %v1140_v28, %s1856_s0 }
 0x187   :  { %v2592_v44 = vld.sshfl [vmem:[#allocation1 + $0x30] sm:$0xff pattern:$0x75316420]  ;;  %3028 = vst [vmem:[#allocation28_spill] sm:$0xff] %v2669_v37 }
 0x188   :  { %3025 = vst [vmem:[#allocation25_spill] sm:$0xff] %v2592_v44  ;;  %v574_v4 = vpop.permute.xlu1 %573  ;;  %1240 = vrot.lane.b32.xlu0 %v1145_v24, %s1856_s0 }
 0x189   :  { %809 = vst [vmem:[#allocation1 + $0x30] ss:$2 sm:$0xff] %v2589_v57 }
 0x18a   :  { %v560_v38 = vpop.permute.xlu0 %559 }
 0x18b   :  { %1238 = vrot.lane.b32.xlu2 %v1141_v35, %s1856_s0  ;;  %v2601_v3 = vadd.f32 %v560_v38, %v2260_v21  ;;  %v1149_v21 = vrot.slane %v1147_v48, 4  ;;  %v2635_v48 = vadd.f32 %v572_v17, %v2241_v58 }
 0x18d   :  { %v582_v28 = vpop.permute.xlu2 %581  ;;  %797 = vst [vmem:[#allocation1 + $0x20] ss:$2 sm:$0xff] %v2601_v3 }
 0x18e   :  { %v2609_v24 = vadd.f32 %v582_v28, %v2331_v51  ;;  %1242 = vrot.lane.b32.xlu1 %v1148_v16, %s1856_s0  ;;  %v2624_v51 = vadd.f32 %v2531_v14, %v2237_v56  ;;  %v805_v14 = vld.sshfl [vmem:[#allocation1] sm:$0xff pattern:$0x75316420] }
 0x190   :  { %814 = vst [vmem:[#allocation1 + $0x10] ss:$2 sm:$0xff] %v2609_v24  ;;  %v562_v35 = vpop.permute.xlu1 %561 }
 0x191   :  { %v2616_v29 = vadd.f32 %v562_v35, %v2266_v25  ;;  %v2632_v25 = vadd.f32 %v574_v4, %v2245_v30  ;;  %v811_v4 = vld.sshfl [vmem:[#allocation1 + $0x30] sm:$0xff pattern:$0x75316420] }
 0x192   :  { %v2618_v38 = vpop.permute.xlu0 %595 }
 0x193   :  { %1244 = vrot.lane.b32.xlu2 %v1149_v21, %s1856_s0  ;;  %798 = vst [vmem:[#allocation1 + $0x21] ss:$2 sm:$0xff] %v2616_v29 }
 0x195   :  { %v606_v19 = vpop.permute.xlu2 %605 }
 0x196   :  { %v2646_v30 = vadd.f32 %v606_v19, %v2370_v63  ;;  %v2662_v63 = vadd.f32 %v600_v22, %v2303_v2 }
 0x197   :  { %v2626_v9 = vld.sshfl [vmem:[#allocation1 + $0x10] sm:$0xff pattern:$0x75316420] }
 0x198   :  { %824 = vst [vmem:[#allocation1 + $0x10] ss:$2 sm:$0xff] %v2624_v51  ;;  %v2629_v28 = vpop.permute.xlu1 %597 }
 0x19a   :  { %v2637_v16 = vld.sshfl [vmem:[#allocation1 + $0x20] sm:$0xff pattern:$0x75316420]  ;;  %v578_v35 = vpop.permute.xlu0 %577 }
 0x19b   :  { %3027 = vst [vmem:[#allocation27_spill] sm:$0xff] %v2637_v16  ;;  %v2641_v56 = vadd.f32 %v578_v35, %v2306_v5 }
 0x19c   :  { %808 = vst [vmem:[#allocation1 + $0x21] ss:$2 sm:$0xff] %v2632_v25 }
 0x19d   :  { %807 = vst [vmem:[#allocation1 + $0x20] ss:$2 sm:$0xff] %v2635_v48  ;;  %v588_v21 = vpop.permute.xlu2 %587 }
 0x19e   :  { %812 = vst [vmem:[#allocation1] ss:$2 sm:$0xff] %v2641_v56  ;;  %v2649_v58 = vadd.f32 %v588_v21, %v2380_v1 }
 0x19f   :  { %v2651_v17 = vld.sshfl [vmem:[#allocation1 + $0x10] sm:$0xff pattern:$0x75316420] }
 0x1a0   :  { %834 = vst [vmem:[#allocation1 + $0x10] ss:$2 sm:$0xff] %v2646_v30  ;;  %v580_v44 = vpop.permute.xlu1 %579 }
 0x1a1   :  { %819 = vst [vmem:[#allocation1 + $0x30] ss:$2 sm:$0xff] %v2649_v58  ;;  %v2656_v5 = vadd.f32 %v580_v44, %v2316_v27  ;;  %v2674_v27 = vadd.f32 %v2579_v36, %v2208_v23 }
 0x1a2   :  { %v602_v35 = vpop.permute.xlu0 %601 }
 0x1a3   :  { %813 = vst [vmem:[#allocation1 + $0x1] ss:$2 sm:$0xff] %v2656_v5 }
 0x1a4   :  { %3029 = vst [vmem:[#allocation29_spill] sm:$0xff] %v2674_v27 }
 0x1a5   :  { %v2659_v16 = vpop.permute.xlu2 %1196 }
 0x1a7   :  { %v2664_v1 = vld.sshfl [vmem:[#allocation1 + $0x10] sm:$0xff pattern:$0x75316420] }
 0x1a8   :  { %v821_v19 = vld.sshfl [vmem:[#allocation1 + $0x30] sm:$0xff pattern:$0x75316420]  ;;  %v604_v21 = vpop.permute.xlu1 %603  ;;  %1394 = vst [vmem:[#allocation1 + $0x10] ss:$2 sm:$0xff] %v2280_v41 }
 0x1a9   :  { %829 = vst [vmem:[#allocation1 + $0x30] ss:$2 sm:$0xff] %v2662_v63  ;;  %v810_v41 = vld.sshfl [vmem:[#allocation1 + $0x20] sm:$0xff pattern:$0x75316420] }
 0x1aa   :  { %v815_v44 = vld.sshfl [vmem:[#allocation1] sm:$0xff pattern:$0x75316420]  ;;  %v584_v13 = vpop.permute.xlu0 %583 }
 0x1ab   :  { %822 = vst [vmem:[#allocation1] ss:$2 sm:$0xff] %v2669_v37  ;;  %v2678_v2 = vadd.f32 %v584_v13, %v2364_v39  ;;  %v2695_v13 = vadd.f32 %v602_v35, %v2333_v20  ;;  %v948_v20 = vsel %vm875_vm7, %v2612_v10, -inf  ;;  %v966_v10 = vsel %vm875_vm7, %v2626_v9, -inf }
 0x1ac   :  { %823 = vst [vmem:[#allocation1 + $0x1] ss:$2 sm:$0xff] %v2674_v27  ;;  %v3040_v27 = vld [vmem:[#allocation7_spill] sm:$0xff] }
 0x1ad   :  { %3030 = vst [vmem:[#allocation30_spill] sm:$0xff] %v2678_v2  ;;  %v612_v22 = vpop.permute.xlu2 %611 }
 0x1ae   :  { %817 = vst [vmem:[#allocation1 + $0x20] ss:$2 sm:$0xff] %v2678_v2  ;;  %v2683_v15 = vadd.f32 %v612_v22, %v2424_v59  ;;  %v2700_v59 = vadd.f32 %v604_v21, %v2340_v7  ;;  %v957_v7 = vsel %vm875_vm7, %v811_v4, -inf  ;;  %v965_v21 = vsel %vm176_vm0, %v815_v44, -inf }
 0x1af   :  { %v2685_v6 = vld.sshfl [vmem:[#allocation1 + $0x10] sm:$0xff pattern:$0x75316420]  ;;  %3033 = vst [vmem:[#allocation33_spill] sm:$0xff] %v2695_v13  ;;  %v2727_v4 = vadd.f32 %v2629_v28, %v2293_v53 }
 0x1b0   :  { %3031 = vst [vmem:[#allocation31_spill] sm:$0xff] %v2683_v15  ;;  %v2687_v23 = vld.sshfl [vmem:[#allocation1 + $0x30] sm:$0xff pattern:$0x75316420]  ;;  %v586_v36 = vpop.permute.xlu1 %585 }
 0x1b1   :  { %1407 = vst [vmem:[#allocation1 + $0x10] ss:$2 sm:$0xff] %v2402_v33  ;;  %v2692_v39 = vadd.f32 %v586_v36, %v2366_v40  ;;  %v947_v33 = vsel %vm176_vm0, %v805_v14, -inf  ;;  %v956_v40 = vsel %vm176_vm0, %v810_v41, -inf  ;;  %v2720_v41 = vadd.f32 %v2618_v38, %v2289_v49 }
 0x1b2   :  { %839 = vst [vmem:[#allocation1 + $0x30] ss:$2 sm:$0xff] %v2683_v15  ;;  %v2697_v34 = vpop.permute.xlu0 %1192  ;;  %v949_v36 = vmax.f32 %v947_v33, %v948_v20  ;;  %v958_v14 = vmax.f32 %v956_v40, %v957_v7  ;;  %v967_v20 = vmax.f32 %v965_v21, %v966_v10  ;;  %v975_v49 = vsel %vm875_vm7, %v821_v19, -inf }
 0x1b3   :  { %3032 = vst [vmem:[#allocation32_spill] sm:$0xff] %v2692_v39  ;;  %v825_v60 = vld.sshfl [vmem:[#allocation1] sm:$0xff pattern:$0x75316420] }
 0x1b4   :  { %3034 = vst [vmem:[#allocation34_spill] sm:$0xff] %v2700_v59  ;;  %v968_v53 = vrot.slane %v967_v20, 4  ;;  %v983_v21 = vsel %vm176_vm0, %v825_v60, -inf }
 0x1b5   :  { %818 = vst [vmem:[#allocation1 + $0x21] ss:$2 sm:$0xff] %v2692_v39  ;;  %v1203_v22 = vpop.permute.xlu2 %1202 }
 0x1b6   :  { %832 = vst [vmem:[#allocation1] ss:$2 sm:$0xff] %v2695_v13 }
 0x1b7   :  { %833 = vst [vmem:[#allocation1 + $0x1] ss:$2 sm:$0xff] %v2700_v59 }
 0x1b8   :  { %v2709_v35 = vld.sshfl [vmem:[#allocation1 + $0x10] sm:$0xff pattern:$0x75316420]  ;;  %v2713_v39 = vpop.permute.xlu1 %1194  ;;  %3035 = vst [vmem:[#allocation35_spill] sm:$0xff] %v2720_v41 }
 0x1b9   :  { %v2715_v13 = vld.sshfl [vmem:[#allocation1 + $0x30] sm:$0xff pattern:$0x75316420]  ;;  %1417 = vst [vmem:[#allocation1 + $0x10] ss:$2 sm:$0xff] %v2235_v55  ;;  %v950_v55 = vrot.slane %v949_v36, 4 }
 0x1ba   :  { %1402 = vst [vmem:[#allocation1 + $0x30] ss:$2 sm:$0xff] %v2310_v18  ;;  %v608_v33 = vpop.permute.xlu0 %607  ;;  %v959_v18 = vrot.slane %v958_v14, 4 }
 0x1bb   :  { %3036 = vst [vmem:[#allocation36_spill] sm:$0xff] %v2727_v4  ;;  %v2750_v60 = vadd.f32 %v608_v33, %v2406_v0  ;;  %v1002_v0 = vsel %vm875_vm7, %v2664_v1, -inf }
 0x1bc   :  { %v820_v44 = vld.sshfl [vmem:[#allocation1 + $0x20] sm:$0xff pattern:$0x75316420] }
 0x1bd   :  { %827 = vst [vmem:[#allocation1 + $0x20] ss:$2 sm:$0xff] %v2720_v41  ;;  %v974_v40 = vsel %vm176_vm0, %v820_v44, -inf  ;;  %v2734_v9 = vpop.permute.xlu2 %1208  ;;  %v951_v44 = vmax.f32 %v949_v36, %v950_v55  ;;  %v969_v36 = vmax.f32 %v967_v20, %v968_v53 }
 0x1be   :  { %v835_v38 = vld.sshfl [vmem:[#allocation1] sm:$0xff pattern:$0x75316420]  ;;  %828 = vst [vmem:[#allocation1 + $0x21] ss:$2 sm:$0xff] %v2727_v4  ;;  %v976_v7 = vmax.f32 %v974_v40, %v975_v49  ;;  %v960_v4 = vmax.f32 %v958_v14, %v959_v18 }
 0x1bf   :  { %1390 = vst [vmem:[#allocation1] ss:$2 sm:$0xff] %v2254_v8  ;;  %v984_v8 = vsel %vm875_vm7, %v2651_v17, -inf  ;;  %v1001_v59 = vsel %vm176_vm0, %v835_v38, -inf  ;;  %v952_v14 = vrot.slane %v951_v44, 2  ;;  %v970_v53 = vrot.slane %v969_v36, 2 }
 0x1c0   :  { %1392 = vst [vmem:[#allocation1 + $0x1] ss:$2 sm:$0xff] %v2286_v46  ;;  %v977_v28 = vrot.slane %v976_v7, 4  ;;  %v2738_v10 = vld.sshfl [vmem:[#allocation1 + $0x10] sm:$0xff pattern:$0x75316420]  ;;  %v610_v41 = vpop.permute.xlu1 %609  ;;  %v985_v46 = vmax.f32 %v983_v21, %v984_v8  ;;  %v1003_v18 = vmax.f32 %v1001_v59, %v1002_v0 }
 0x1c1   :  { %v2740_v19 = vld.sshfl [vmem:[#allocation1 + $0x30] sm:$0xff pattern:$0x75316420]  ;;  %1427 = vst [vmem:[#allocation1 + $0x10] ss:$2 sm:$0xff] %v2469_v45  ;;  %v2746_v40 = vadd.f32 %v610_v41, %v2416_v31  ;;  %v961_v17 = vrot.slane %v960_v4, 2 }
 0x1c2   :  { %1412 = vst [vmem:[#allocation1 + $0x30] ss:$2 sm:$0xff] %v2503_v54  ;;  %v2752_v49 = vpop.permute.xlu0 %1198  ;;  %v978_v55 = vmax.f32 %v976_v7, %v977_v28  ;;  %v993_v54 = vsel %vm875_vm7, %v2687_v23, -inf  ;;  %v986_v20 = vrot.slane %v985_v46, 4  ;;  %v1320_v7 = vadd.f32 %v1203_v22, %v2467_v42 }
 0x1c3   :  { %3037 = vst [vmem:[#allocation37_spill] sm:$0xff] %v2746_v40  ;;  %v1004_v22 = vrot.slane %v1003_v18, 4 }
 0x1c4   :  { %3038 = vst [vmem:[#allocation38_spill] sm:$0xff] %v2750_v60  ;;  %v979_v28 = vrot.slane %v978_v55, 2  ;;  %v987_v59 = vmax.f32 %v985_v46, %v986_v20  ;;  %v1011_v46 = vsel %vm875_vm7, %v2715_v13, -inf  ;;  %v1317_v20 = vadd.f32 %v2659_v16, %v2571_v62 }
 0x1c5   :  { %v830_v45 = vld.sshfl [vmem:[#allocation1 + $0x20] sm:$0xff pattern:$0x75316420]  ;;  %v1215_v41 = vpop.permute.xlu2 %1214 }
 0x1c6   :  { %837 = vst [vmem:[#allocation1 + $0x20] ss:$2 sm:$0xff] %v2750_v60  ;;  %v992_v31 = vsel %vm176_vm0, %v830_v45, -inf  ;;  %v953_v45 = vmax.f32 %v951_v44, %v952_v14  ;;  %v962_v60 = vmax.f32 %v960_v4, %v961_v17  ;;  %v980_v0 = vmax.f32 %v978_v55, %v979_v28  ;;  %v3041_v14 = vld [vmem:[#allocation9_spill] sm:$0xff] }
 0x1c7   :  { %838 = vst [vmem:[#allocation1 + $0x21] ss:$2 sm:$0xff] %v2746_v40  ;;  %v2762_v33 = vld.sshfl [vmem:[#allocation1] sm:$0xff pattern:$0x75316420]  ;;  %v994_v38 = vmax.f32 %v992_v31, %v993_v54  ;;  %v3039_v31 = vld [vmem:[#allocation8_spill] sm:$0xff]  ;;  %v971_v54 = vmax.f32 %v969_v36, %v970_v53  ;;  %v1005_v44 = vmax.f32 %v1003_v18, %v1004_v22  ;;  %v1326_v18 = vadd.f32 %v1215_v41, %v2609_v24 }
 0x1c8   :  { %1405 = vst [vmem:[#allocation1] ss:$2 sm:$0xff] %v2442_v26  ;;  %v2767_v23 = vld.sshfl [vmem:[#allocation1 + $0x10] sm:$0xff pattern:$0x75316420]  ;;  %v2769_v1 = vpop.permute.xlu1 %1200  ;;  %v954_v40 = vrot.slane %v953_v45, 1 }
 0x1c9   :  { %1406 = vst [vmem:[#allocation1 + $0x1] ss:$2 sm:$0xff] %v2455_v52  ;;  %v995_v21 = vrot.slane %v994_v38, 4  ;;  %v2771_v8 = vld.sshfl [vmem:[#allocation1 + $0x30] sm:$0xff pattern:$0x75316420] }
 0x1ca   :  { %1437 = vst [vmem:[#allocation1 + $0x10] ss:$2 sm:$0xff] %v1320_v7  ;;  %v2774_v26 = vpop.permute.xlu0 %1204  ;;  %v963_v2 = vrot.slane %v962_v60, 1  ;;  %v988_v7 = vrot.slane %v987_v59, 2  ;;  %v972_v36 = vrot.slane %v971_v54, 1  ;;  %v981_v53 = vrot.slane %v980_v0, 1 }
 0x1cb   :  { %1422 = vst [vmem:[#allocation1 + $0x30] ss:$2 sm:$0xff] %v3039_v31  ;;  %v996_v42 = vmax.f32 %v994_v38, %v995_v21  ;;  %v3042_v38 = vld [vmem:[#allocation5_spill] sm:$0xff]  ;;  %v3044_v21 = vld [vmem:[#allocation6_spill] sm:$0xff] }
 0x1cc   :  { %v964_v22 = vmax.f32 %v962_v60, %v963_v2  ;;  %v973_v62 = vmax.f32 %v971_v54, %v972_v36  ;;  %v982_v24 = vmax.f32 %v980_v0, %v981_v53  ;;  %v1323_v54 = vadd.f32 %v2734_v9, %v2589_v57 }
 0x1cd   :  { %v997_v15 = vrot.slane %v996_v42, 2  ;;  %v2777_v37 = vpop.permute.xlu2 %1220 }
 0x1ce   :  { %v840_v52 = vld.sshfl [vmem:[#allocation1 + $0x20] sm:$0xff pattern:$0x75316420] }
 0x1cf   :  { %1398 = vst [vmem:[#allocation1 + $0x20] ss:$2 sm:$0xff] %v3040_v27  ;;  %v1010_v4 = vsel %vm176_vm0, %v840_v52, -inf  ;;  %v998_v31 = vmax.f32 %v996_v42, %v997_v15  ;;  %v989_v52 = vmax.f32 %v987_v59, %v988_v7  ;;  %v1519_v42 = vsel %vm1509_vm12, %v2740_v19, -inf }
 0x1d0   :  { %1400 = vst [vmem:[#allocation1 + $0x21] ss:$2 sm:$0xff] %v3041_v14  ;;  %v1408_v17 = vld.sshfl [vmem:[#allocation1] sm:$0xff pattern:$0x75316420]  ;;  %v1012_v55 = vmax.f32 %v1010_v4, %v1011_v46  ;;  %v2789_v28 = vpop.permute.xlu1 %1206  ;;  %v1006_v4 = vrot.slane %v1005_v44, 2  ;;  %v955_v14 = vmax.f32 %v953_v45, %v954_v40 }
 0x1d1   :  { %1415 = vst [vmem:[#allocation1] ss:$2 sm:$0xff] %v3042_v38  ;;  %v2786_v27 = vld.sshfl [vmem:[#allocation1 + $0x10] sm:$0xff pattern:$0x75316420]  ;;  %v999_v41 = vrot.slane %v998_v31, 1 }
 0x1d2   :  { %3043 = vst [vmem:[#allocation8_spill] sm:$0xff] %v2786_v27  ;;  %v2792_v13 = vld.sshfl [vmem:[#allocation1 + $0x30] sm:$0xff pattern:$0x75316420]  ;;  %v2794_v46 = vpop.permute.xlu0 %1210  ;;  %v1013_v16 = vrot.slane %v1012_v55, 4  ;;  %v990_v15 = vrot.slane %v989_v52, 1  ;;  %v1007_v2 = vmax.f32 %v1005_v44, %v1006_v4  ;;  %v1683_v60 = vsel %vm1669_vm8, %v964_v22, %v955_v14 }
 0x1d3   :  { %1416 = vst [vmem:[#allocation1 + $0x1] ss:$2 sm:$0xff] %v3044_v21  ;;  %v1684_v45 = vsel %vm1671_vm9, %v973_v62, %v1683_v60  ;;  %v1508_v44 = vsel %vm1507_vm10, %v2762_v33, -inf  ;;  %v1000_v57 = vmax.f32 %v998_v31, %v999_v41 }
 0x1d4   :  { %1432 = vst [vmem:[#allocation1 + $0x30] ss:$2 sm:$0xff] %v1317_v20  ;;  %v1014_v38 = vmax.f32 %v1012_v55, %v1013_v16  ;;  %v1527_v20 = vsel %vm1507_vm10, %v1408_v17, -inf  ;;  %v1008_v33 = vrot.slane %v1007_v2, 1  ;;  %v3045_v17 = vld [vmem:[#allocation11_spill] sm:$0xff] }
 0x1d5   :  { %1447 = vst [vmem:[#allocation1 + $0x10] ss:$2 sm:$0xff] %v1326_v18  ;;  %v1227_v21 = vpop.permute.xlu2 %1226  ;;  %v1309_v31 = vadd.f32 %v3045_v17, %v2557_v43  ;;  %v1318_v43 = vadd.f32 %v2752_v49, %v2519_v32 }
 0x1d6   :  { %v1015_v40 = vrot.slane %v1014_v38, 2  ;;  %v1332_v0 = vadd.f32 %v1227_v21, %v2624_v51  ;;  %v991_v51 = vmax.f32 %v989_v52, %v990_v15  ;;  %v1009_v14 = vmax.f32 %v1007_v2, %v1008_v33 }
 0x1d7   :  { %v1403_v27 = vld.sshfl [vmem:[#allocation1 + $0x20] sm:$0xff pattern:$0x75316420]  ;;  %v1316_v33 = vadd.f32 %v2713_v39, %v2616_v29 }
 0x1d8   :  { %1410 = vst [vmem:[#allocation1 + $0x20] ss:$2 sm:$0xff] %v2564_v47  ;;  %v1518_v59 = vsel %vm1507_vm10, %v1403_v27, -inf  ;;  %v1685_v47 = vsel %vm1673_vm11, %v982_v24, %v1684_v45  ;;  %v2809_v36 = vpop.permute.xlu1 %1212  ;;  %v1016_v9 = vmax.f32 %v1014_v38, %v1015_v40  ;;  %v1537_v38 = vsel %vm1509_vm12, %v2771_v8, -inf  ;;  %v3046_v40 = vld [vmem:[#allocation13_spill] sm:$0xff] }
 0x1d9   :  { %1411 = vst [vmem:[#allocation1 + $0x21] ss:$2 sm:$0xff] %v2552_v61  ;;  %v1520_v55 = vmax.f32 %v1518_v59, %v1519_v42  ;;  %v1510_v61 = vsel %vm1509_vm12, %v2685_v6, -inf }
 0x1da   :  { %v1418_v7 = vld.sshfl [vmem:[#allocation1] sm:$0xff pattern:$0x75316420]  ;;  %v2818_v27 = vpop.permute.xlu0 %1216  ;;  %v1511_v53 = vmax.f32 %v1508_v44, %v1510_v61  ;;  %v1017_v4 = vrot.slane %v1016_v9, 1 }
 0x1db   :  { %1425 = vst [vmem:[#allocation1] ss:$2 sm:$0xff] %v2498_v12  ;;  %v2812_v19 = vld.sshfl [vmem:[#allocation1 + $0x30] sm:$0xff pattern:$0x75316420]  ;;  %v1528_v12 = vsel %vm1509_vm12, %v2709_v35, -inf }
 0x1dc   :  { %1426 = vst [vmem:[#allocation1 + $0x1] ss:$2 sm:$0xff] %v2515_v11  ;;  %v2822_v18 = vld.sshfl [vmem:[#allocation1 + $0x10] sm:$0xff pattern:$0x75316420]  ;;  %v1529_v22 = vmax.f32 %v1527_v20, %v1528_v12  ;;  %v1686_v11 = vsel %vm1675_vm13, %v991_v51, %v1685_v47  ;;  %v1521_v6 = vrot.slane %v1520_v55, 4  ;;  %v1018_v21 = vmax.f32 %v1016_v9, %v1017_v4 }
 0x1dd   :  { %1442 = vst [vmem:[#allocation1 + $0x30] ss:$2 sm:$0xff] %v1323_v54  ;;  %v1545_v52 = vsel %vm1507_vm10, %v1418_v7, -inf  ;;  %v1687_v62 = vsel %vm1677_vm14, %v1000_v57, %v1686_v11  ;;  %v1233_v16 = vpop.permute.xlu2 %1232  ;;  %v1546_v35 = vsel %vm1509_vm12, %v2738_v10, -inf  ;;  %v1512_v41 = vrot.slane %v1511_v53, 4 }
 0x1de   :  { %1457 = vst [vmem:[#allocation1 + $0x10] ss:$2 sm:$0xff] %v1332_v0  ;;  %v1530_v15 = vrot.slane %v1529_v22, 4  ;;  %v1547_v59 = vmax.f32 %v1545_v52, %v1546_v35  ;;  %v1688_v42 = vsel %vm1679_vm15, %v1009_v14, %v1687_v62  ;;  %v1319_v10 = vadd.f32 %v2769_v1, %v2513_v50 }
 0x1df   :  { %v1522_v49 = vmax.f32 %v1520_v55, %v1521_v6  ;;  %v2843_v8 = vsel %vm1681_vm1, %v1018_v21, %v1688_v42  ;;  %v1329_v54 = vadd.f32 %v2777_v37, %v2649_v58  ;;  %v1513_v44 = vmax.f32 %v1511_v53, %v1512_v41 }
 0x1e0   :  { %v1413_v24 = vld.sshfl [vmem:[#allocation1 + $0x20] sm:$0xff pattern:$0x75316420]  ;;  %v2839_v2 = vpop.permute.xlu1 %1218  ;;  %v1531_v1 = vmax.f32 %v1529_v22, %v1530_v15  ;;  %v1548_v20 = vrot.slane %v1547_v59, 4  ;;  %v1564_v9 = vsel %vm1509_vm12, %v2767_v23, -inf  ;;  %v1315_v37 = vadd.f32 %v2697_v34, %v2601_v3 }
 0x1e1   :  { %1420 = vst [vmem:[#allocation1 + $0x20] ss:$2 sm:$0xff] %v1309_v31  ;;  %v1536_v60 = vsel %vm1507_vm10, %v1413_v24, -inf  ;;  %v1523_v55 = vrot.slane %v1522_v49, 2  ;;  %v1514_v58 = vrot.slane %v1513_v44, 2  ;;  %v1555_v31 = vsel %vm1509_vm12, %v2792_v13, -inf }
 0x1e2   :  { %1421 = vst [vmem:[#allocation1 + $0x21] ss:$2 sm:$0xff] %v3046_v40  ;;  %v1538_v45 = vmax.f32 %v1536_v60, %v1537_v38  ;;  %v1223_v7 = vpop.permute.xlu0 %1222  ;;  %v1532_v12 = vrot.slane %v1531_v1, 2  ;;  %v1549_v17 = vmax.f32 %v1547_v59, %v1548_v20  ;;  %v1324_v22 = vadd.f32 %v2794_v46, %v2641_v56 }
 0x1e3   :  { %v1428_v32 = vld.sshfl [vmem:[#allocation1] sm:$0xff pattern:$0x75316420]  ;;  %v1524_v23 = vmax.f32 %v1522_v49, %v1523_v55  ;;  %v1325_v34 = vadd.f32 %v2809_v36, %v2656_v5  ;;  %v1335_v13 = vadd.f32 %v1233_v16, %v2662_v63  ;;  %v1515_v62 = vmax.f32 %v1513_v44, %v1514_v58 }
 0x1e4   :  { %v1563_v0 = vsel %vm1507_vm10, %v1428_v32, -inf  ;;  %1435 = vst [vmem:[#allocation1] ss:$2 sm:$0xff] %v1318_v43  ;;  %v1539_v47 = vrot.slane %v1538_v45, 4  ;;  %v1533_v35 = vmax.f32 %v1531_v1, %v1532_v12  ;;  %v1550_v14 = vrot.slane %v1549_v17, 2  ;;  %v3048_v32 = vld [vmem:[#allocation29_spill] sm:$0xff] }
 0x1e5   :  { %1436 = vst [vmem:[#allocation1 + $0x1] ss:$2 sm:$0xff] %v1319_v10  ;;  %v2848_v50 = vld.sshfl [vmem:[#allocation1 + $0x30] sm:$0xff pattern:$0x75316420]  ;;  %v1239_v61 = vpop.permute.xlu2 %1238  ;;  %v1565_v51 = vmax.f32 %v1563_v0, %v1564_v9  ;;  %v1525_v5 = vrot.slane %v1524_v23, 1  ;;  %v1321_v63 = vadd.f32 %v2774_v26, %v2635_v48  ;;  %v1322_v16 = vadd.f32 %v2789_v28, %v2632_v25 }
 0x1e6   :  { %1452 = vst [vmem:[#allocation1 + $0x30] ss:$2 sm:$0xff] %v1329_v54  ;;  %v1540_v57 = vmax.f32 %v1538_v45, %v1539_v47  ;;  %v1338_v3 = vadd.f32 %v1239_v61, %v2646_v30  ;;  %v2871_v30 = vld.sshfl [vmem:[#allocation1 + $0x10] sm:$0xff pattern:$0x75316420]  ;;  %v1516_v21 = vrot.slane %v1515_v62, 1  ;;  %v1551_v60 = vmax.f32 %v1549_v17, %v1550_v14 }
 0x1e7   :  { %v1566_v39 = vrot.slane %v1565_v51, 4  ;;  %v1534_v15 = vrot.slane %v1533_v35, 1  ;;  %v1573_v42 = vsel %vm1509_vm12, %v2812_v19, -inf  ;;  %v3047_v10 = vld [vmem:[#allocation28_spill] sm:$0xff]  ;;  %v1526_v0 = vmax.f32 %v1524_v23, %v1525_v5  ;;  %v3049_v26 = vld [vmem:[#allocation31_spill] sm:$0xff]  ;;  %v3050_v12 = vld [vmem:[#allocation30_spill] sm:$0xff] }
 0x1e8   :  { %v1225_v11 = vpop.permute.xlu1 %1224  ;;  %v1541_v6 = vrot.slane %v1540_v57, 2  ;;  %1467 = vst [vmem:[#allocation1 + $0x10] ss:$2 sm:$0xff] %v1338_v3  ;;  %v1330_v40 = vadd.f32 %v1223_v7, %v3047_v10  ;;  %v1517_v1 = vmax.f32 %v1515_v62, %v1516_v21  ;;  %v1552_v58 = vrot.slane %v1551_v60, 1  ;;  %v3052_v3 = vld [vmem:[#allocation32_spill] sm:$0xff] }
 0x1e9   :  { %v1423_v53 = vld.sshfl [vmem:[#allocation1 + $0x20] sm:$0xff pattern:$0x75316420]  ;;  %v1567_v41 = vmax.f32 %v1565_v51, %v1566_v39  ;;  %v1331_v49 = vadd.f32 %v1225_v11, %v3048_v32  ;;  %v1327_v17 = vadd.f32 %v2818_v27, %v3050_v12  ;;  %v1591_v5 = vsel %vm1509_vm12, %v2848_v50, -inf  ;;  %v3054_v21 = vld [vmem:[#allocation8_spill] sm:$0xff]  ;;  %v3055_v32 = vld [vmem:[#allocation35_spill] sm:$0xff] }
 0x1ea   :  { %1430 = vst [vmem:[#allocation1 + $0x20] ss:$2 sm:$0xff] %v1315_v37  ;;  %v1554_v52 = vsel %vm1507_vm10, %v1423_v53, -inf  ;;  %v2869_v46 = vpop.permute.xlu0 %1228  ;;  %v1542_v36 = vmax.f32 %v1540_v57, %v1541_v6  ;;  %v1708_v61 = vsel %vm1669_vm8, %v1526_v0, %v1517_v1  ;;  %v1535_v37 = vmax.f32 %v1533_v35, %v1534_v15  ;;  %v3053_v39 = vld [vmem:[#allocation34_spill] sm:$0xff]  ;;  %v3056_v0 = vld [vmem:[#allocation36_spill] sm:$0xff]  ;;  %v3057_v12 = vld [vmem:[#allocation37_spill] sm:$0xff] }
 0x1eb   :  { %1431 = vst [vmem:[#allocation1 + $0x21] ss:$2 sm:$0xff] %v1316_v33  ;;  %v1556_v29 = vmax.f32 %v1554_v52, %v1555_v31  ;;  %v1568_v28 = vrot.slane %v1567_v41, 2  ;;  %v1553_v62 = vmax.f32 %v1551_v60, %v1552_v58  ;;  %v1582_v15 = vsel %vm1509_vm12, %v3054_v21, -inf }
 0x1ec   :  { %v2864_v4 = vld.sshfl [vmem:[#allocation1] sm:$0xff pattern:$0x75316420]  ;;  %v1543_v48 = vrot.slane %v1542_v36, 1  ;;  %v1709_v31 = vsel %vm1671_vm9, %v1535_v37, %v1708_v61 }
 0x1ed   :  { %1445 = vst [vmem:[#allocation1] ss:$2 sm:$0xff] %v1324_v22  ;;  %v2867_v56 = vld.sshfl [vmem:[#allocation1 + $0x30] sm:$0xff pattern:$0x75316420]  ;;  %v1557_v43 = vrot.slane %v1556_v29, 4  ;;  %v1245_v38 = vpop.permute.xlu2 %1244  ;;  %v1569_v33 = vmax.f32 %v1567_v41, %v1568_v28 }
 0x1ee   :  { %1446 = vst [vmem:[#allocation1 + $0x1] ss:$2 sm:$0xff] %v1325_v34  ;;  %v1341_v44 = vadd.f32 %v1245_v38, %v3049_v26  ;;  %v1544_v55 = vmax.f32 %v1542_v36, %v1543_v48  ;;  %v3051_v22 = vld [vmem:[#allocation33_spill] sm:$0xff]  ;;  %v1581_v41 = vsel %vm1507_vm10, %v2864_v4, -inf  ;;  %v1600_v4 = vsel %vm1509_vm12, %v2822_v18, -inf }
 0x1ef   :  { %1462 = vst [vmem:[#allocation1 + $0x30] ss:$2 sm:$0xff] %v1335_v13  ;;  %v1558_v24 = vmax.f32 %v1556_v29, %v1557_v43  ;;  %v1328_v29 = vadd.f32 %v2839_v2, %v3052_v3  ;;  %v1570_v35 = vrot.slane %v1569_v33, 1 }
 0x1f0   :  { %v2881_v45 = vpop.permute.xlu1 %1230  ;;  %v1710_v34 = vsel %vm1673_vm11, %v1544_v55, %v1709_v31 }
 0x1f1   :  { %v1559_v59 = vrot.slane %v1558_v24, 2  ;;  %v1711_v36 = vsel %vm1675_vm13, %v1553_v62, %v1710_v34  ;;  %v1571_v38 = vmax.f32 %v1569_v33, %v1570_v35  ;;  %v1334_v48 = vadd.f32 %v2881_v45, %v3056_v0 }
 0x1f2   :  { %v1433_v54 = vld.sshfl [vmem:[#allocation1 + $0x20] sm:$0xff pattern:$0x75316420]  ;;  %v1235_v51 = vpop.permute.xlu0 %1234 }
 0x1f3   :  { %v1560_v25 = vmax.f32 %v1558_v24, %v1559_v59  ;;  %v1572_v47 = vsel %vm1507_vm10, %v1433_v54, -inf  ;;  %1440 = vst [vmem:[#allocation1 + $0x20] ss:$2 sm:$0xff] %v1321_v63  ;;  %v1336_v11 = vadd.f32 %v1235_v51, %v3051_v22  ;;  %v1583_v59 = vmax.f32 %v1581_v41, %v1582_v15 }
 0x1f4   :  { %v1574_v20 = vmax.f32 %v1572_v47, %v1573_v42  ;;  %1441 = vst [vmem:[#allocation1 + $0x21] ss:$2 sm:$0xff] %v1322_v16  ;;  %v1469_v47 = vld.sshfl [vmem:[#allocation1 + $0x10] sm:$0xff pattern:$0x75316420] }
 0x1f5   :  { %v1448_v19 = vld.sshfl [vmem:[#allocation1] sm:$0xff pattern:$0x75316420]  ;;  %v1561_v57 = vrot.slane %v1560_v25, 1  ;;  %v1636_v51 = vsel %vm1509_vm12, %v1469_v47, -inf }
 0x1f6   :  { %1455 = vst [vmem:[#allocation1] ss:$2 sm:$0xff] %v1330_v40  ;;  %v2885_v7 = vld.sshfl [vmem:[#allocation1 + $0x30] sm:$0xff pattern:$0x75316420]  ;;  %v1575_v9 = vrot.slane %v1574_v20, 4 }
 0x1f7   :  { %1456 = vst [vmem:[#allocation1 + $0x1] ss:$2 sm:$0xff] %v1331_v49  ;;  %v1562_v6 = vmax.f32 %v1560_v25, %v1561_v57  ;;  %v1599_v50 = vsel %vm1507_vm10, %v1448_v19, -inf  ;;  %v1333_v49 = vadd.f32 %v2869_v46, %v3055_v32  ;;  %v1609_v25 = vsel %vm1509_vm12, %v2867_v56, -inf }
 0x1f8   :  { %1472 = vst [vmem:[#allocation1 + $0x30] ss:$2 sm:$0xff] %v1341_v44  ;;  %v1576_v53 = vmax.f32 %v1574_v20, %v1575_v9  ;;  %v1237_v23 = vpop.permute.xlu1 %1236  ;;  %v1601_v54 = vmax.f32 %v1599_v50, %v1600_v4  ;;  %v1584_v44 = vrot.slane %v1583_v59, 4  ;;  %v1618_v19 = vsel %vm1509_vm12, %v2871_v30, -inf }
 0x1f9   :  { %v1337_v13 = vadd.f32 %v1237_v23, %v3053_v39  ;;  %v1712_v63 = vsel %vm1677_vm14, %v1562_v6, %v1711_v36  ;;  %v1627_v39 = vsel %vm1509_vm12, %v2885_v7, -inf }
 0x1fa   :  { %v1577_v52 = vrot.slane %v1576_v53, 2  ;;  %v1713_v42 = vsel %vm1679_vm15, %v1571_v38, %v1712_v63  ;;  %v1602_v55 = vrot.slane %v1601_v54, 4  ;;  %v1585_v61 = vmax.f32 %v1583_v59, %v1584_v44  ;;  %v1241_v37 = vpop.permute.xlu0 %1240 }
 0x1fb   :  { %v1443_v14 = vld.sshfl [vmem:[#allocation1 + $0x20] sm:$0xff pattern:$0x75316420] }
 0x1fc   :  { %v1578_v43 = vmax.f32 %v1576_v53, %v1577_v52  ;;  %1450 = vst [vmem:[#allocation1 + $0x20] ss:$2 sm:$0xff] %v1327_v17  ;;  %v1590_v27 = vsel %vm1507_vm10, %v1443_v14, -inf  ;;  %v1603_v31 = vmax.f32 %v1601_v54, %v1602_v55  ;;  %v1586_v30 = vrot.slane %v1585_v61, 2 }
 0x1fd   :  { %1451 = vst [vmem:[#allocation1 + $0x21] ss:$2 sm:$0xff] %v1328_v29  ;;  %v1592_v16 = vmax.f32 %v1590_v27, %v1591_v5 }
 0x1fe   :  { %v1458_v24 = vld.sshfl [vmem:[#allocation1] sm:$0xff pattern:$0x75316420]  ;;  %v1579_v2 = vrot.slane %v1578_v43, 1  ;;  %v1587_v14 = vmax.f32 %v1585_v61, %v1586_v30 }
 0x1ff   :  { %1465 = vst [vmem:[#allocation1] ss:$2 sm:$0xff] %v1336_v11  ;;  %v1593_v40 = vrot.slane %v1592_v16, 4  ;;  %v1617_v28 = vsel %vm1507_vm10, %v1458_v24, -inf  ;;  %v3058_v11 = vld [vmem:[#allocation38_spill] sm:$0xff] }
 0x200   :  { %1466 = vst [vmem:[#allocation1 + $0x1] ss:$2 sm:$0xff] %v1337_v13  ;;  %v1580_v60 = vmax.f32 %v1578_v43, %v1579_v2  ;;  %v1619_v45 = vmax.f32 %v1617_v28, %v1618_v19  ;;  %v1243_v9 = vpop.permute.xlu1 %1242  ;;  %v1339_v23 = vadd.f32 %v1241_v37, %v3058_v11  ;;  %v1604_v13 = vrot.slane %v1603_v31, 2  ;;  %v1474_v24 = vld.sshfl [vmem:[#allocation1 + $0x30] sm:$0xff pattern:$0x75316420] }
 0x201   :  { %v1594_v46 = vmax.f32 %v1592_v16, %v1593_v40  ;;  %v1340_v17 = vadd.f32 %v1243_v9, %v3057_v12  ;;  %v1588_v16 = vrot.slane %v1587_v14, 1  ;;  %v1645_v7 = vsel %vm1509_vm12, %v1474_v24, -inf }
 0x202   :  { %v1714_v10 = vsel %vm1681_vm1, %v1580_v60, %v1713_v42  ;;  %v1620_v22 = vrot.slane %v1619_v45, 4  ;;  %v1605_v41 = vmax.f32 %v1603_v31, %v1604_v13 }
 0x203   :  { %1722 = vrot.lane.b32.xlu0 %v1714_v10, %s1855_s23  ;;  %v1595_v33 = vrot.slane %v1594_v46, 2  ;;  %v1589_v4 = vmax.f32 %v1587_v14, %v1588_v16 }
 0x204   :  { %v1453_v26 = vld.sshfl [vmem:[#allocation1 + $0x20] sm:$0xff pattern:$0x75316420]  ;;  %v1621_v62 = vmax.f32 %v1619_v45, %v1620_v22  ;;  %v1606_v50 = vrot.slane %v1605_v41, 1  ;;  %v3062_v22 = vld [vmem:[#allocation19_spill] sm:$0xff] }
 0x205   :  { %1460 = vst [vmem:[#allocation1 + $0x20] ss:$2 sm:$0xff] %v1333_v49  ;;  %v1608_v18 = vsel %vm1507_vm10, %v1453_v26, -inf  ;;  %v1596_v34 = vmax.f32 %v1594_v46, %v1595_v33  ;;  %v885_v11 = vsel %vm875_vm7, %v3062_v22, -inf }
 0x206   :  { %1461 = vst [vmem:[#allocation1 + $0x21] ss:$2 sm:$0xff] %v1334_v48  ;;  %v1610_v20 = vmax.f32 %v1608_v18, %v1609_v25  ;;  %v1622_v2 = vrot.slane %v1621_v62, 2  ;;  %v1607_v44 = vmax.f32 %v1605_v41, %v1606_v50 }
 0x207   :  { %v1468_v1 = vld.sshfl [vmem:[#allocation1] sm:$0xff pattern:$0x75316420]  ;;  %v1597_v5 = vrot.slane %v1596_v34, 1 }
 0x208   :  { %v1635_v57 = vsel %vm1507_vm10, %v1468_v1, -inf  ;;  %v1611_v56 = vrot.slane %v1610_v20, 4  ;;  %v1623_v42 = vmax.f32 %v1621_v62, %v1622_v2  ;;  %v3066_v62 = vld [vmem:[#allocation20_spill] sm:$0xff] }
 0x209   :  { %v1637_v58 = vmax.f32 %v1635_v57, %v1636_v51  ;;  %v1598_v60 = vmax.f32 %v1596_v34, %v1597_v5 }
 0x20a   :  { %v1612_v53 = vmax.f32 %v1610_v20, %v1611_v56  ;;  %v1624_v25 = vrot.slane %v1623_v42, 1 }
 0x20b   :  { %v1638_v52 = vrot.slane %v1637_v58, 4  ;;  %v1715_v26 = vsel %vm1669_vm8, %v1598_v60, %v1589_v4 }
 0x20c   :  { %v1613_v3 = vrot.slane %v1612_v53, 2  ;;  %v1716_v18 = vsel %vm1671_vm9, %v1607_v44, %v1715_v26  ;;  %v1625_v19 = vmax.f32 %v1623_v42, %v1624_v25  ;;  %v3074_v26 = vld [vmem:[#allocation17_spill] sm:$0xff] }
 0x20d   :  { %v1463_v6 = vld.sshfl [vmem:[#allocation1 + $0x20] sm:$0xff pattern:$0x75316420]  ;;  %v1639_v27 = vmax.f32 %v1637_v58, %v1638_v52  ;;  %v930_v44 = vsel %vm875_vm7, %v3074_v26, -inf }
 0x20e   :  { %1470 = vst [vmem:[#allocation1 + $0x20] ss:$2 sm:$0xff] %v1339_v23  ;;  %v1626_v29 = vsel %vm1507_vm10, %v1463_v6, -inf  ;;  %v1614_v36 = vmax.f32 %v1612_v53, %v1613_v3  ;;  %v3059_v58 = vld [vmem:[#allocation22_spill] sm:$0xff]  ;;  %v3063_v23 = vld [vmem:[#allocation23_spill] sm:$0xff]  ;;  %v3065_v3 = vld [vmem:[#allocation12_spill] sm:$0xff] }
 0x20f   :  { %1471 = vst [vmem:[#allocation1 + $0x21] ss:$2 sm:$0xff] %v1340_v17  ;;  %v1628_v35 = vmax.f32 %v1626_v29, %v1627_v39  ;;  %v1640_v21 = vrot.slane %v1639_v27, 2  ;;  %v884_v33 = vsel %vm176_vm0, %v3059_v58, -inf  ;;  %v3060_v53 = vld [vmem:[#allocation14_spill] sm:$0xff]  ;;  %v3061_v17 = vld [vmem:[#allocation16_spill] sm:$0xff] }
 0x210   :  { %v1615_v59 = vrot.slane %v1614_v36, 1  ;;  %v874_v12 = vsel %vm176_vm0, %v3060_v53, -inf  ;;  %v893_v31 = vsel %vm176_vm0, %v3061_v17, -inf  ;;  %v902_v30 = vsel %vm176_vm0, %v3063_v23, -inf  ;;  %v3064_v6 = vld [vmem:[#allocation10_spill] sm:$0xff] }
 0x211   :  { %v1629_v43 = vrot.slane %v1628_v35, 4  ;;  %v1641_v49 = vmax.f32 %v1639_v27, %v1640_v21  ;;  %v876_v52 = vsel %vm875_vm7, %v3064_v6, -inf  ;;  %v886_v34 = vmax.f32 %v884_v33, %v885_v11  ;;  %v3070_v21 = vld [vmem:[#allocation15_spill] sm:$0xff] }
 0x212   :  { %v1616_v54 = vmax.f32 %v1614_v36, %v1615_v59  ;;  %v894_v29 = vsel %vm875_vm7, %v3065_v3, -inf  ;;  %v877_v39 = vmax.f32 %v874_v12, %v876_v52  ;;  %v3068_v36 = vld [vmem:[#allocation18_spill] sm:$0xff] }
 0x213   :  { %v1630_v63 = vmax.f32 %v1628_v35, %v1629_v43  ;;  %v1642_v47 = vrot.slane %v1641_v49, 1  ;;  %v895_v13 = vmax.f32 %v893_v31, %v894_v29  ;;  %v903_v35 = vsel %vm875_vm7, %v3066_v62, -inf  ;;  %v3067_v43 = vld [vmem:[#allocation26_spill] sm:$0xff] }
 0x214   :  { %v1717_v20 = vsel %vm1673_vm11, %v1616_v54, %v1716_v18  ;;  %v904_v14 = vmax.f32 %v902_v30, %v903_v35  ;;  %v920_v27 = vsel %vm176_vm0, %v3067_v43, -inf  ;;  %v887_v5 = vrot.slane %v886_v34, 4 }
 0x215   :  { %v1631_v38 = vrot.slane %v1630_v63, 2  ;;  %v1643_v45 = vmax.f32 %v1641_v49, %v1642_v47  ;;  %v1718_v57 = vsel %vm1675_vm13, %v1625_v19, %v1717_v20  ;;  %v911_v24 = vsel %vm176_vm0, %v3068_v36, -inf  ;;  %v3073_v49 = vld [vmem:[#allocation25_spill] sm:$0xff] }
 0x216   :  { %v1473_v15 = vld.sshfl [vmem:[#allocation1 + $0x20] sm:$0xff pattern:$0x75316420]  ;;  %v878_v41 = vrot.slane %v877_v39, 4  ;;  %v896_v2 = vrot.slane %v895_v13, 4  ;;  %v888_v42 = vmax.f32 %v886_v34, %v887_v5  ;;  %v939_v54 = vsel %vm875_vm7, %v3073_v49, -inf }
 0x217   :  { %v1632_v10 = vmax.f32 %v1630_v63, %v1631_v38  ;;  %v1644_v40 = vsel %vm1507_vm10, %v1473_v15, -inf  ;;  %v3069_v63 = vld [vmem:[#allocation24_spill] sm:$0xff]  ;;  %v905_v38 = vrot.slane %v904_v14, 4  ;;  %v912_v15 = vsel %vm875_vm7, %v3070_v21, -inf }
 0x218   :  { %v1646_v32 = vmax.f32 %v1644_v40, %v1645_v7  ;;  %v921_v16 = vsel %vm875_vm7, %v3069_v63, -inf  ;;  %v913_v59 = vmax.f32 %v911_v24, %v912_v15  ;;  %v3071_v7 = vld [vmem:[#allocation27_spill] sm:$0xff]  ;;  %v879_v4 = vmax.f32 %v877_v39, %v878_v41  ;;  %v1828_v15 = vld [vmem:[%s2988_s2] ss:$0 sm:$0xff]  ;;  %s1858_s2 = smov 128  }
 0x219   :  { %v1633_v0 = vrot.slane %v1632_v10, 1  ;;  %v922_v60 = vmax.f32 %v920_v27, %v921_v16  ;;  %v938_v50 = vsel %vm176_vm0, %v3071_v7, -inf  ;;  %v889_v18 = vrot.slane %v888_v42, 2 }
 0x21a   :  { %v1647_v48 = vrot.slane %v1646_v32, 4  ;;  %v940_v25 = vmax.f32 %v938_v50, %v939_v54 }
 0x21b   :  { %v1634_v1 = vmax.f32 %v1632_v10, %v1633_v0  ;;  %v3072_v10 = vld [vmem:[#allocation21_spill] sm:$0xff]  ;;  %v906_v0 = vmax.f32 %v904_v14, %v905_v38 }
 0x21c   :  { %v1648_v28 = vmax.f32 %v1646_v32, %v1647_v48  ;;  %v929_v40 = vsel %vm176_vm0, %v3072_v10, -inf  ;;  %v897_v32 = vmax.f32 %v895_v13, %v896_v2  ;;  %v923_v48 = vrot.slane %v922_v60, 4 }
 0x21d   :  { %v1719_v61 = vsel %vm1677_vm14, %v1634_v1, %v1718_v57  ;;  %v931_v47 = vmax.f32 %v929_v40, %v930_v44  ;;  %v907_v20 = vrot.slane %v906_v0, 2 }
 0x21e   :  { %v1649_v46 = vrot.slane %v1648_v28, 2  ;;  %v1720_v51 = vsel %vm1679_vm15, %v1643_v45, %v1719_v61  ;;  %v898_v1 = vrot.slane %v897_v32, 2  ;;  %v924_v19 = vmax.f32 %v922_v60, %v923_v48 }
 0x21f   :  { %v932_v57 = vrot.slane %v931_v47, 4 }
 0x220   :  { %v1650_v55 = vmax.f32 %v1648_v28, %v1649_v46  ;;  %v914_v28 = vrot.slane %v913_v59, 4  ;;  %v880_v46 = vrot.slane %v879_v4, 2  ;;  %v899_v61 = vmax.f32 %v897_v32, %v898_v1 }
 0x221   :  { %v933_v53 = vmax.f32 %v931_v47, %v932_v57 }
 0x222   :  { %v1651_v9 = vrot.slane %v1650_v55, 1  ;;  %v915_v45 = vmax.f32 %v913_v59, %v914_v28  ;;  %v900_v17 = vrot.slane %v899_v61, 1 }
 0x223   :  { %v934_v6 = vrot.slane %v933_v53, 2 }
 0x224   :  { %v1652_v56 = vmax.f32 %v1650_v55, %v1651_v9  ;;  %v941_v55 = vrot.slane %v940_v25, 4  ;;  %v890_v9 = vmax.f32 %v888_v42, %v889_v18  ;;  %v916_v33 = vrot.slane %v915_v45, 2 }
 0x225   :  { %v901_v34 = vmax.f32 %v899_v61, %v900_v17  ;;  %v935_v35 = vmax.f32 %v933_v53, %v934_v6 }
 0x226   :  { %v1721_v37 = vsel %vm1681_vm1, %v1652_v56, %v1720_v51  ;;  %v881_v56 = vmax.f32 %v879_v4, %v880_v46  ;;  %v908_v51 = vmax.f32 %v906_v0, %v907_v20  ;;  %v942_v58 = vmax.f32 %v940_v25, %v941_v55 }
 0x227   :  { %1724 = vrot.lane.b32.xlu1 %v1721_v37, %s1855_s23  ;;  %v925_v37 = vrot.slane %v924_v19, 2  ;;  %v891_v12 = vrot.slane %v890_v9, 1  ;;  %v917_v30 = vmax.f32 %v915_v45, %v916_v33  ;;  %v936_v41 = vrot.slane %v935_v35, 1 }
 0x228   :  { %v882_v31 = vrot.slane %v881_v56, 1  ;;  %v909_v22 = vrot.slane %v908_v51, 1  ;;  %v943_v23 = vrot.slane %v942_v58, 2 }
 0x229   :  { %v926_v11 = vmax.f32 %v924_v19, %v925_v37  ;;  %v892_v52 = vmax.f32 %v890_v9, %v891_v12  ;;  %v918_v62 = vrot.slane %v917_v30, 1  ;;  %v937_v38 = vmax.f32 %v935_v35, %v936_v41 }
 0x22a   :  { %v883_v3 = vmax.f32 %v881_v56, %v882_v31  ;;  %v910_v29 = vmax.f32 %v908_v51, %v909_v22  ;;  %v944_v13 = vmax.f32 %v942_v58, %v943_v23 }
 0x22b   :  { %v927_v39 = vrot.slane %v926_v11, 1  ;;  %v919_v24 = vmax.f32 %v917_v30, %v918_v62 }
 0x22c   :  { %v1670_v14 = vsel %vm1669_vm8, %v892_v52, %v883_v3  ;;  %v945_v5 = vrot.slane %v944_v13, 1 }
 0x22d   :  { %v1672_v43 = vsel %vm1671_vm9, %v901_v34, %v1670_v14  ;;  %v928_v27 = vmax.f32 %v926_v11, %v927_v39 }
 0x22e   :  { %v1674_v36 = vsel %vm1673_vm11, %v910_v29, %v1672_v43  ;;  %v946_v63 = vmax.f32 %v944_v13, %v945_v5 }
 0x22f   :  { %v1676_v2 = vsel %vm1675_vm13, %v919_v24, %v1674_v36 }
 0x230   :  { %v1678_v16 = vsel %vm1677_vm14, %v928_v27, %v1676_v2 }
 0x231   :  { %v1680_v21 = vsel %vm1679_vm15, %v937_v38, %v1678_v16 }
 0x232   :  { %v1682_v60 = vsel %vm1681_vm1, %v946_v63, %v1680_v21 }
 0x275   :  { %v1723_v59 = vpop.permute.xlu0 %1722 }
 0x276   :  { %v1728_v7 = vsel %vm176_vm0, %v1682_v60, %v1723_v59 }
 0x277   :  { %v1731_v50 = vsel %vm1730_vm2, %v1728_v7, 0.0 }
 0x278   :  { %v1737_v42 = vadd.f32 %v1828_v15, %v1731_v50 }
 0x27a   :  { %v1739_v10 = vmax.f32 %v1737_v42, 0.0 }
 0x27c   :  { %1741 = vst [vmem:[#allocation2] sm:$0xff] %v1739_v10 }
 0x299   :  { %v1725_v40 = vpop.permute.xlu1 %1724 }
 0x29a   :  { %v1729_v4 = vsel %vm176_vm0, %v2843_v8, %v1725_v40 }
 0x29b   :  { %v1732_v32 = vsel %vm1730_vm2, %v1729_v4, 0.0 }
 0x29c   :  { %v1738_v49 = vadd.f32 %v1828_v15, %v1732_v32 }
 0x29e   :  { %v1740_v54 = vmax.f32 %v1738_v49, 0.0 }
 0x2a0   :  { %1742 = vst [vmem:[#allocation2 + $0x8] sm:$0xff] %v1740_v54 }
 0x2a1   :  { %1755 = dma.vmem_to_hbm [thread:$0]  %s1748_s27, 256, %s1750_s30, [#allocation3], %s1858_s2, %s1858_s2, %s1859_s4  }
 0x2a2   :  { %1853 = dma.done.wait [#allocation3], 256  }
 0x2a3   :  { %1854 = vsyncadd [#allocation3], 4294967040 }
 0x2a4   :  { %1760 = vsyncpa [#allocation3], 1 }

</bundles_post_ra>
